<compile_context>
chip_gen: v7x
topology: tpu7x:2x2x1
jax: 0.10.0
libtpu: 0.0.40
codegen_flags: <defaults>
</compile_context>

<pallas_src>
import math
from functools import partial

import jax
import jax.numpy as jnp
import numpy as np
from jax.experimental import pallas as pl
from jax.experimental.pallas import tpu as pltpu


def _round_up(a, b):
    return (a + b - 1) // b * b


def _vmem_limit_bytes(working_set_bytes):
    """Clamp a working-set estimate into [32 MiB, physical VMEM - 16 MiB headroom]."""
    try:
        cap = int(pltpu.get_tpu_info().vmem_capacity_bytes)
    except Exception:
        cap = 64 * 1024 * 1024  # v7x-safe fallback (smallest physical VMEM per TC)
    lo = 32 * 1024 * 1024
    hi = max(lo, cap - 16 * 1024 * 1024)
    return int(min(max(int(working_set_bytes), lo), hi))


# ----------------------------------------------------------------------------
# FeedForward hidden-dim rule (LLaMA-style FeedForward(dim, hidden, multiple_of, mult))
# ----------------------------------------------------------------------------
def _ffn_hidden_dim(hidden_dim, multiple_of, ffn_dim_multiplier):
    hidden_dim = int(2 * hidden_dim / 3)
    if ffn_dim_multiplier is not None:
        hidden_dim = int(ffn_dim_multiplier * hidden_dim)
    hidden_dim = multiple_of * ((hidden_dim + multiple_of - 1) // multiple_of)
    return hidden_dim


# ----------------------------------------------------------------------------
# One-time expert-weight packing (hoisted out of the forward path).
#   w1/w3: (E, C, H), w2: (E, H, C) f32  ->  w13: (E, Kt, C, 2*th) bf16, w2: (E, H_pad, C) bf16
# ----------------------------------------------------------------------------
def pack_expert_weights(w1, w3, w2, *, th=512):
    E, C, H = w1.shape
    if H <= th:
        th_eff, h_pad = H, H                      # single H tile, no padding needed
    else:
        th_eff = _round_up(min(th, H), 128)       # MXU/lane-aligned hidden tile
        h_pad = _round_up(H, th_eff)
    if h_pad != H:
        # Zero W1/W3 columns and zero W2 rows are exact no-ops in SwiGLU.
        w1 = jnp.pad(w1, ((0, 0), (0, 0), (0, h_pad - H)))
        w3 = jnp.pad(w3, ((0, 0), (0, 0), (0, h_pad - H)))
        w2 = jnp.pad(w2, ((0, h_pad - H), (0, 0)) if w2.ndim == 2
                     else ((0, 0), (0, h_pad - H), (0, 0)))
    kt = h_pad // th_eff
    w1r = w1.reshape(E, C, kt, th_eff).transpose(0, 2, 1, 3)   # (E, Kt, C, th)
    w3r = w3.reshape(E, C, kt, th_eff).transpose(0, 2, 1, 3)
    w13 = jnp.concatenate([w1r, w3r], axis=-1).astype(jnp.bfloat16)  # (E, Kt, C, 2*th)
    return {"w13": w13, "w2": w2.astype(jnp.bfloat16), "th": int(th_eff)}


# ----------------------------------------------------------------------------
# Pallas kernel 1: gated mixture of SwiGLU experts
#   out[n] = sum_e probs[n, e] * ( silu(x[n] @ W1_e) * (x[n] @ W3_e) ) @ W2_e
# Grid: (token_tile i, expert e, hidden_tile kh); f32 VMEM accumulation over (e, kh).
# ----------------------------------------------------------------------------
def _moe_ffn_kernel(x_ref, p_ref, w13_ref, w2_ref, o_ref, acc_ref, *, th):
    e = pl.program_id(1)
    kh = pl.program_id(2)

    @pl.when((e == 0) & (kh == 0))
    def _():
        acc_ref[...] = jnp.zeros_like(acc_ref)

    x = x_ref[...]                                                        # (tn, C)    bf16
    h13 = jnp.dot(x, w13_ref[0, 0], preferred_element_type=jnp.float32)   # (tn, 2*th) f32 (fused W1|W3 on MXU)
    h1 = h13[:, :th]
    h3 = h13[:, th:]
    h = (h1 * jax.nn.sigmoid(h1)) * h3                                    # SiLU gate, f32 (VPU/EUP)
    y = jnp.dot(h.astype(w2_ref.dtype), w2_ref[0],
                preferred_element_type=jnp.float32)                       # (tn, C)    f32 (MXU)
    acc_ref[...] += p_ref[0] * y                                          # p: (tn, 1) f32 column

    @pl.when((e == pl.num_programs(1) - 1) & (kh == pl.num_programs(2) - 1))
    def _():
        o_ref[...] = acc_ref[...].astype(o_ref.dtype)


def moe_ffn_weighted_sum(x_flat, probs, pack, *, tn=512):
    """x_flat: (N, C), probs: (N, E), pack from pack_expert_weights -> (N, C)."""
    w13, w2, th = pack["w13"], pack["w2"], int(pack["th"])
    N, C = x_flat.shape
    E = probs.shape[1]
    h_pad = w2.shape[1]
    kt = h_pad // th
    out_dtype = x_flat.dtype

    # Token tiling: 128-aligned (MXU/lane friendly on all chip gens), clamped to padded N.
    tn = _round_up(min(int(tn), _round_up(N, 128)), 128)
    n_pad = _round_up(N, tn)
    if n_pad != N:
        x_flat = jnp.pad(x_flat, ((0, n_pad - N), (0, 0)))   # zero rows -> zero contribution
        probs = jnp.pad(probs, ((0, n_pad - N), (0, 0)))

    x_b = x_flat.astype(jnp.bfloat16)
    # Probs pre-transposed to (E, N, 1): each grid step DMAs exactly its (tn, 1) column.
    probs_t = jnp.transpose(probs.astype(jnp.float32))[:, :, None]

    # Working-set estimate: double-buffered x/p/w13/w2/out + f32 accumulator + intermediates.
    ws = (2 * (tn * C * 2 + tn * 4 + C * 2 * th * 2 + th * C * 2 + tn * C * 4)
          + tn * C * 4 + tn * (3 * th + C) * 4 + (4 << 20))

    grid = (n_pad // tn, E, kt)
    out = pl.pallas_call(
        partial(_moe_ffn_kernel, th=th),
        out_shape=jax.ShapeDtypeStruct((n_pad, C), out_dtype),
        grid_spec=pltpu.PrefetchScalarGridSpec(
            num_scalar_prefetch=0,
            grid=grid,
            in_specs=[
                pl.BlockSpec((tn, C), lambda i, e, kh: (i, 0)),
                pl.BlockSpec((1, tn, 1), lambda i, e, kh: (e, i, 0)),
                pl.BlockSpec((1, 1, C, 2 * th), lambda i, e, kh: (e, kh, 0, 0)),
                pl.BlockSpec((1, th, C), lambda i, e, kh: (e, kh, 0)),
            ],
            out_specs=pl.BlockSpec((tn, C), lambda i, e, kh: (i, 0)),
            scratch_shapes=[pltpu.VMEM((tn, C), jnp.float32)],
        ),
        compiler_params=pltpu.CompilerParams(
            dimension_semantics=("parallel", "arbitrary", "arbitrary"),
            vmem_limit_bytes=_vmem_limit_bytes(ws),
        ),
    )(x_b, probs_t, w13, w2)
    return out[:N]
    # TODO(synk): inference (hard one-hot gating) fast path: scalar-prefetch per-tile expert
    # ids into the w13/w2 index_maps so only 1 of E experts is streamed/computed per tile.


def moe_ffn_weighted_sum_ref(x_flat, probs, w1, w3, w2):
    h1 = jnp.einsum("nc,ech->neh", x_flat, w1)
    h3 = jnp.einsum("nc,ech->neh", x_flat, w3)
    y = jnp.einsum("neh,ehc->nec", jax.nn.silu(h1) * h3, w2)
    return jnp.einsum("nec,ne->nc", y, probs)


# ----------------------------------------------------------------------------
# Pallas kernel 2: multi-head scaled-dot-product attention core.
#   - head_dim % 128 == 0: head-parallel grid, lane-aligned (T, dh) blocks per step.
#   - small head_dim (demo dh=4): all heads per batch step, single lane-dense (T, C) store.
# ----------------------------------------------------------------------------
def _mha_head_kernel(q_ref, k_ref, v_ref, o_ref, *, scale):
    q = q_ref[0]                                                          # (T, dh) bf16
    k = k_ref[0]                                                          # (S, dh) bf16
    v = v_ref[0]                                                          # (S, dh) bf16
    s = jax.lax.dot_general(q, k, (((1,), (1,)), ((), ())),
                            preferred_element_type=jnp.float32) * scale   # (T, S) f32
    s = s - jnp.max(s, axis=-1, keepdims=True)
    p = jnp.exp(s)
    l = jnp.sum(p, axis=-1, keepdims=True)
    p = p * pl.reciprocal(l, approx=True)                                 # EUP divide
    o_ref[0] = jnp.dot(p.astype(v.dtype), v,
                       preferred_element_type=jnp.float32).astype(o_ref.dtype)
    # TODO(synk): add a kv-axis grid dimension with online softmax (flash pattern) for long S.


def _mha_packed_kernel(q_ref, k_ref, v_ref, o_ref, *, nheads, scale):
    q = q_ref[0]                                                          # (T, C) bf16
    k = k_ref[0]                                                          # (S, C) bf16
    v = v_ref[0]                                                          # (S, C) bf16
    C = q.shape[-1]
    dh = C // nheads
    outs = []
    for h in range(nheads):                                               # static unroll
        lo = h * dh
        qh = q[:, lo:lo + dh]
        kh = k[:, lo:lo + dh]
        vh = v[:, lo:lo + dh]
        s = jax.lax.dot_general(qh, kh, (((1,), (1,)), ((), ())),
                                preferred_element_type=jnp.float32) * scale
        s = s - jnp.max(s, axis=-1, keepdims=True)
        p = jnp.exp(s)
        l = jnp.sum(p, axis=-1, keepdims=True)
        p = p * pl.reciprocal(l, approx=True)
        outs.append(jnp.dot(p.astype(vh.dtype), vh, preferred_element_type=jnp.float32))
    o_ref[0] = jnp.concatenate(outs, axis=-1).astype(o_ref.dtype)         # lane-dense (T, C)


def mha_attention(q, k, v, *, nheads):
    """q: (B, T, C), k/v: (B, S, C) -> (B, T, C)."""
    B, T, C = q.shape
    S = k.shape[1]
    dh = C // nheads
    scale = 1.0 / math.sqrt(dh)
    qb = q.astype(jnp.bfloat16)
    kb = k.astype(jnp.bfloat16)
    vb = v.astype(jnp.bfloat16)

    if dh % 128 == 0:
        # Head-parallel path: no in-kernel lane slicing / concat relayouts.
        def split_heads(t, L):
            return t.reshape(B, L, nheads, dh).transpose(0, 2, 1, 3).reshape(B * nheads, L, dh)

        qh, kh, vh = split_heads(qb, T), split_heads(kb, S), split_heads(vb, S)
        ws = 4 * (T * dh + 2 * S * dh) * 2 + 2 * T * S * 4 + T * dh * 4 + (8 << 20)
        out = pl.pallas_call(
            partial(_mha_head_kernel, scale=scale),
            out_shape=jax.ShapeDtypeStruct((B * nheads, T, dh), q.dtype),
            grid_spec=pltpu.PrefetchScalarGridSpec(
                num_scalar_prefetch=0,
                grid=(B * nheads,),
                in_specs=[
                    pl.BlockSpec((1, T, dh), lambda b: (b, 0, 0)),
                    pl.BlockSpec((1, S, dh), lambda b: (b, 0, 0)),
                    pl.BlockSpec((1, S, dh), lambda b: (b, 0, 0)),
                ],
                out_specs=pl.BlockSpec((1, T, dh), lambda b: (b, 0, 0)),
            ),
            compiler_params=pltpu.CompilerParams(
                dimension_semantics=("parallel",),
                vmem_limit_bytes=_vmem_limit_bytes(ws),
            ),
        )(qh, kh, vh)
        return out.reshape(B, nheads, T, dh).transpose(0, 2, 1, 3).reshape(B, T, C)

    # Small-dh path: all heads in one batch step, single lane-dense (T, C) store.
    ws = 4 * (T * C + 2 * S * C) * 2 + 2 * T * S * 4 + T * C * 4 + (8 << 20)
    return pl.pallas_call(
        partial(_mha_packed_kernel, nheads=nheads, scale=scale),
        out_shape=jax.ShapeDtypeStruct((B, T, C), q.dtype),
        grid_spec=pltpu.PrefetchScalarGridSpec(
            num_scalar_prefetch=0,
            grid=(B,),
            in_specs=[
                pl.BlockSpec((1, T, C), lambda b: (b, 0, 0)),
                pl.BlockSpec((1, S, C), lambda b: (b, 0, 0)),
                pl.BlockSpec((1, S, C), lambda b: (b, 0, 0)),
            ],
            out_specs=pl.BlockSpec((1, T, C), lambda b: (b, 0, 0)),
        ),
        compiler_params=pltpu.CompilerParams(
            dimension_semantics=("parallel",),
            vmem_limit_bytes=_vmem_limit_bytes(ws),
        ),
    )(qb, kb, vb)


def mha_attention_ref(q, k, v, *, nheads):
    B, T, C = q.shape
    S = k.shape[1]
    dh = C // nheads
    qh = q.reshape(B, T, nheads, dh).transpose(0, 2, 1, 3)
    kh = k.reshape(B, S, nheads, dh).transpose(0, 2, 1, 3)
    vh = v.reshape(B, S, nheads, dh).transpose(0, 2, 1, 3)
    s = jnp.einsum("bhtd,bhsd->bhts", qh, kh) / math.sqrt(dh)
    p = jax.nn.softmax(s, axis=-1)
    o = jnp.einsum("bhts,bhsd->bhtd", p, vh)
    return o.transpose(0, 2, 1, 3).reshape(B, T, C)


# ----------------------------------------------------------------------------
# Plain-JAX glue
# ----------------------------------------------------------------------------
def gumbel_softmax(key, logits, temperature, hard=False):
    # TODO(synk): torch samples gumbel noise via empty_like().exponential_().log();
    # jax.random.gumbel is the same distribution but a different RNG stream.
    g = jax.random.gumbel(key, logits.shape, dtype=logits.dtype)
    y_soft = jax.nn.softmax((logits + g) / temperature, axis=-1)
    if hard:
        idx = jnp.argmax(y_soft, axis=-1)
        y_hard = jax.nn.one_hot(idx, logits.shape[-1], dtype=logits.dtype)
        return y_hard - jax.lax.stop_gradient(y_soft) + y_soft  # straight-through estimator
    return y_soft


def init_params(key, dim, hidden_dim, num_experts, multiple_of, ffn_dim_multiplier):
    H = _ffn_hidden_dim(hidden_dim, multiple_of, ffn_dim_multiplier)
    ks = jax.random.split(key, 15)

    def nrm(k, shape, scale=0.05):
        return scale * jax.random.normal(k, shape, dtype=jnp.float32)

    return dict(
        lang_emb=nrm(ks[0], (9, dim)),
        lang_gate_w=nrm(ks[1], (dim, num_experts)),
        lang_gate_b=nrm(ks[2], (num_experts,)),
        lang_w1=nrm(ks[3], (num_experts, dim, H)),   # (E, C, H) = torch w1.weight.T per expert
        lang_w3=nrm(ks[4], (num_experts, dim, H)),
        lang_w2=nrm(ks[5], (num_experts, H, dim)),
        in_proj_w=nrm(ks[6], (3 * dim, dim)),
        in_proj_b=nrm(ks[7], (3 * dim,)),
        out_proj_w=nrm(ks[8], (dim, dim)),
        out_proj_b=nrm(ks[9], (dim,)),
        cap_gate_w=nrm(ks[10], (dim, num_experts)),
        cap_gate_b=nrm(ks[11], (num_experts,)),
        cap_w1=nrm(ks[12], (num_experts, dim, H)),
        cap_w3=nrm(ks[13], (num_experts, dim, H)),
        cap_w2=nrm(ks[14], (num_experts, H, dim)),
    )


def prepare_params(params, *, th=512):
    """One-time bf16 packing of the expert weights (hoisted out of the forward path)."""
    params = dict(params)
    params["lang_pack"] = pack_expert_weights(
        params["lang_w1"], params["lang_w3"], params["lang_w2"], th=th)
    params["cap_pack"] = pack_expert_weights(
        params["cap_w1"], params["cap_w3"], params["cap_w2"], th=th)
    return params


def moe_forward(params, x, time, caption, language, *, temperature=2.0,
                training=True, rng=None, use_pallas=True, tn=512):
    del time  # unused in the PyTorch forward as well
    B, T, C = x.shape
    nheads = 8
    x_flat = x.reshape(-1, C)
    k1, k2 = jax.random.split(rng)

    # ---- language gating + language experts ----
    lang_emb = params["lang_emb"][language]                                    # (B, C)
    lang_logits = lang_emb @ params["lang_gate_w"] + params["lang_gate_b"]     # (B, E)
    lang_probs = gumbel_softmax(k1, lang_logits, temperature, hard=not training)
    # TODO(synk): lang probs are per-batch constants; a scalar-prefetch (B, E) SMEM table
    # indexed by token tile would avoid materializing this (B*T, E) repeat.
    lang_probs_rep = jnp.repeat(lang_probs, T, axis=0)                         # (B*T, E)
    if use_pallas:
        first_out = moe_ffn_weighted_sum(x_flat, lang_probs_rep, params["lang_pack"], tn=tn)
    else:
        first_out = moe_ffn_weighted_sum_ref(
            x_flat, lang_probs_rep, params["lang_w1"], params["lang_w3"], params["lang_w2"])

    # ---- cross attention (query = first_out, key/value = caption) ----
    first_reshaped = first_out.reshape(B, T, C)
    wq, wk, wv = jnp.split(params["in_proj_w"], 3, axis=0)
    bq, bk, bv = jnp.split(params["in_proj_b"], 3, axis=0)
    q = first_reshaped @ wq.T + bq                                             # (B, T, C)
    k = caption @ wk.T + bk                                                    # (B, S, C)
    v = caption @ wv.T + bv
    attn_fn = mha_attention if use_pallas else mha_attention_ref
    attn = attn_fn(q, k, v, nheads=nheads)                                     # (B, T, C)
    cross_attn = attn @ params["out_proj_w"].T + params["out_proj_b"]
    cross_flat = cross_attn.reshape(-1, C)

    # ---- caption gating + caption experts ----
    cap_logits = cross_flat @ params["cap_gate_w"] + params["cap_gate_b"]      # (B*T, E)
    cap_probs = gumbel_softmax(k2, cap_logits, temperature, hard=not training)
    if use_pallas:
        second_out = moe_ffn_weighted_sum(first_out, cap_probs, params["cap_pack"], tn=tn)
    else:
        second_out = moe_ffn_weighted_sum_ref(
            first_out, cap_probs, params["cap_w1"], params["cap_w3"], params["cap_w2"])

    total_out = (first_out + second_out).reshape(B, T, C)

    # ---- load balancing loss ----
    all_probs = jnp.concatenate([lang_probs_rep, cap_probs], axis=1)           # (B*T, 2E)
    expert_usage = all_probs.mean(axis=0)
    loss = jnp.sum(expert_usage * jnp.log(expert_usage + 1e-10))
    return total_out, loss


# ----------------------------------------------------------------------------
# main
# ----------------------------------------------------------------------------
if __name__ == "__main__":
    dim, hidden_dim, num_experts = 32, 64, 4
    multiple_of, ffn_mult = 8, 1.0
    # N = B*T = 200 tokens -> one 256-row token tile (tail zero-padded); H = 48 -> one h-tile.
    B, T, S = 2, 100, 8

    key = jax.random.PRNGKey(0)
    kp, kx, kc, kl, kg, kq2, kk2, kv2 = jax.random.split(key, 8)
    params = prepare_params(
        init_params(kp, dim, hidden_dim, num_experts, multiple_of, ffn_mult))

    x = jax.random.normal(kx, (B, T, dim), dtype=jnp.float32)
    caption = jax.random.normal(kc, (B, S, dim), dtype=jnp.float32)
    language = jax.random.randint(kl, (B,), 0, 9)
    time = jnp.zeros((B,), dtype=jnp.float32)  # unused by forward

    run = partial(moe_forward, params, x, time, caption, language, rng=kg)
    out, loss = run(use_pallas=True)
    out = jax.block_until_ready(out)
    loss = jax.block_until_ready(loss)

    out_ref, loss_ref = run(use_pallas=False)
    # Tolerance reflects bf16 MXU operands + approx reciprocal (f32 accumulation kept).
    np.testing.assert_allclose(np.asarray(out), np.asarray(out_ref), rtol=2e-2, atol=1e-2)
    np.testing.assert_allclose(np.asarray(loss), np.asarray(loss_ref), rtol=2e-2, atol=1e-2)

    # Also exercise the head-parallel MHA path (dh = 128), not hit by the dh=4 demo shapes.
    q2 = jax.random.normal(kq2, (2, 16, 256), dtype=jnp.float32)
    k2 = jax.random.normal(kk2, (2, 8, 256), dtype=jnp.float32)
    v2 = jax.random.normal(kv2, (2, 8, 256), dtype=jnp.float32)
    a = jax.block_until_ready(mha_attention(q2, k2, v2, nheads=2))
    a_ref = mha_attention_ref(q2, k2, v2, nheads=2)
    np.testing.assert_allclose(np.asarray(a), np.asarray(a_ref), rtol=2e-2, atol=2e-2)

    print("KERNEL_OK")
</pallas_src>

<mosaic_0001>
module attributes {stable_mosaic.version = 11 : i64} {
  func.func @_moe_ffn_kernel(%arg0: i32, %arg1: i32, %arg2: i32, %arg3: memref<256x32xbf16, #tpu.memory_space<vmem>>, %arg4: memref<1x256x1xf32, #tpu.memory_space<vmem>>, %arg5: memref<1x1x32x96xbf16, #tpu.memory_space<vmem>>, %arg6: memref<1x48x32xbf16, #tpu.memory_space<vmem>>, %arg7: memref<256x32xf32, #tpu.memory_space<vmem>>, %arg8: memref<256x32xf32, #tpu.memory_space<vmem>>) attributes {dimension_semantics = [#tpu.dimension_semantics<parallel>, #tpu.dimension_semantics<arbitrary>, #tpu.dimension_semantics<arbitrary>], iteration_bounds = array<i64: 1, 4, 1>, scalar_prefetch = 0 : i64, scratch_operands = 1 : i64, tpu.core_type = #tpu.core_type<tc>, window_params = [{transform_indices = @transform_0, window_bounds = array<i64: 256, 32>}, {transform_indices = @transform_1, window_bounds = array<i64: 1, 256, 1>}, {transform_indices = @transform_2, window_bounds = array<i64: 1, 1, 32, 96>}, {transform_indices = @transform_3, window_bounds = array<i64: 1, 48, 32>}, {transform_indices = @transform_4, window_bounds = array<i64: 256, 32>}]} {
    %c0_i32 = arith.constant 0 : i32
    %0 = arith.cmpi eq, %arg1, %c0_i32 : i32
    %c0_i32_0 = arith.constant 0 : i32
    %1 = arith.cmpi eq, %arg2, %c0_i32_0 : i32
    %2 = arith.andi %0, %1 : i1
    %3 = arith.extui %2 : i1 to i32
    %c0_i32_1 = arith.constant 0 : i32
    %4 = arith.cmpi ne, %3, %c0_i32_1 : i32
    scf.if %4 {
      %cst_21 = arith.constant 0.000000e+00 : f32
      %34 = vector.broadcast %cst_21 : f32 to vector<256x32xf32>
      %c0_22 = arith.constant 0 : index
      %c0_23 = arith.constant 0 : index
      %35 = vector.load %arg8[%c0_22, %c0_23] : memref<256x32xf32, #tpu.memory_space<vmem>>, vector<256x32xf32>
      tpu.vector_store %arg8[%c0_22, %c0_23], %34 {strides = array<i32>} : memref<256x32xf32, #tpu.memory_space<vmem>>, vector<256x32xf32>,
    } else {
    }
    %c0 = arith.constant 0 : index
    %c0_2 = arith.constant 0 : index
    %5 = vector.load %arg3[%c0, %c0_2] : memref<256x32xbf16, #tpu.memory_space<vmem>>, vector<256x32xbf16>
    %c0_3 = arith.constant 0 : index
    %c0_4 = arith.constant 0 : index
    %c0_5 = arith.constant 0 : index
    %c0_6 = arith.constant 0 : index
    %6 = vector.load %arg5[%c0_3, %c0_4, %c0_5, %c0_6] : memref<1x1x32x96xbf16, #tpu.memory_space<vmem>>, vector<1x1x32x96xbf16>
    %7 = vector.shape_cast %6 : vector<1x1x32x96xbf16> to vector<32x96xbf16>
    %cst = arith.constant dense<0.000000e+00> : vector<256x96xf32>
    %8 = tpu.matmul %5, %7, %cst {dimension_numbers = #tpu.dot_dimension_numbers<[1], [0], [0], [1], [0, 0, 1, 1], [], []>} : vector<256x32xbf16>, vector<32x96xbf16>, vector<256x96xf32> -> vector<256x96xf32>
    %9 = vector.extract_strided_slice %8 {offsets = [0, 0], sizes = [256, 48], strides = [1, 1]} : vector<256x96xf32> to vector<256x48xf32>
    %10 = vector.extract_strided_slice %8 {offsets = [0, 48], sizes = [256, 48], strides = [1, 1]} : vector<256x96xf32> to vector<256x48xf32>
    %11 = arith.negf %9 : vector<256x48xf32>
    %12 = math.exp %11 : vector<256x48xf32>
    %cst_7 = arith.constant 1.000000e+00 : f32
    %13 = vector.broadcast %cst_7 : f32 to vector<256x48xf32>
    %14 = arith.addf %13, %12 : vector<256x48xf32>
    %15 = arith.divf %13, %14 : vector<256x48xf32>
    %16 = arith.mulf %9, %15 : vector<256x48xf32>
    %17 = arith.mulf %16, %10 : vector<256x48xf32>
    %18 = arith.truncf %17 : vector<256x48xf32> to vector<256x48xbf16>
    %c0_8 = arith.constant 0 : index
    %c0_9 = arith.constant 0 : index
    %c0_10 = arith.constant 0 : index
    %19 = vector.load %arg6[%c0_8, %c0_9, %c0_10] : memref<1x48x32xbf16, #tpu.memory_space<vmem>>, vector<1x48x32xbf16>
    %20 = vector.shape_cast %19 : vector<1x48x32xbf16> to vector<48x32xbf16>
    %cst_11 = arith.constant dense<0.000000e+00> : vector<256x32xf32>
    %21 = tpu.matmul %18, %20, %cst_11 {dimension_numbers = #tpu.dot_dimension_numbers<[1], [0], [0], [1], [0, 0, 1, 1], [], []>} : vector<256x48xbf16>, vector<48x32xbf16>, vector<256x32xf32> -> vector<256x32xf32>
    %c0_12 = arith.constant 0 : index
    %c0_13 = arith.constant 0 : index
    %22 = vector.load %arg8[%c0_12, %c0_13] : memref<256x32xf32, #tpu.memory_space<vmem>>, vector<256x32xf32>
    %c0_14 = arith.constant 0 : index
    %c0_15 = arith.constant 0 : index
    %c0_16 = arith.constant 0 : index
    %23 = vector.load %arg4[%c0_14, %c0_15, %c0_16] : memref<1x256x1xf32, #tpu.memory_space<vmem>>, vector<1x256x1xf32>
    %24 = vector.shape_cast %23 : vector<1x256x1xf32> to vector<256x1xf32>
    %25 = vector.broadcast %24 : vector<256x1xf32> to vector<256x32xf32>
    %26 = arith.mulf %25, %21 : vector<256x32xf32>
    %27 = arith.addf %22, %26 : vector<256x32xf32>
    %c0_17 = arith.constant 0 : index
    %c0_18 = arith.constant 0 : index
    %28 = vector.load %arg8[%c0_17, %c0_18] : memref<256x32xf32, #tpu.memory_space<vmem>>, vector<256x32xf32>
    tpu.vector_store %arg8[%c0_17, %c0_18], %27 {strides = array<i32>} : memref<256x32xf32, #tpu.memory_space<vmem>>, vector<256x32xf32>,
    %c3_i32 = arith.constant 3 : i32
    %29 = arith.cmpi eq, %arg1, %c3_i32 : i32
    %c0_i32_19 = arith.constant 0 : i32
    %30 = arith.cmpi eq, %arg2, %c0_i32_19 : i32
    %31 = arith.andi %29, %30 : i1
    %32 = arith.extui %31 : i1 to i32
    %c0_i32_20 = arith.constant 0 : i32
    %33 = arith.cmpi ne, %32, %c0_i32_20 : i32
    scf.if %33 {
      %c0_21 = arith.constant 0 : index
      %c0_22 = arith.constant 0 : index
      %34 = vector.load %arg8[%c0_21, %c0_22] : memref<256x32xf32, #tpu.memory_space<vmem>>, vector<256x32xf32>
      %c0_23 = arith.constant 0 : index
      %c0_24 = arith.constant 0 : index
      %35 = vector.load %arg7[%c0_23, %c0_24] : memref<256x32xf32, #tpu.memory_space<vmem>>, vector<256x32xf32>
      tpu.vector_store %arg7[%c0_23, %c0_24], %34 {strides = array<i32>} : memref<256x32xf32, #tpu.memory_space<vmem>>, vector<256x32xf32>,
    } else {
    }
    return
  }
  func.func @transform_0(%arg0: i32, %arg1: i32, %arg2: i32) -> (i32, i32) {
    %c0_i32 = arith.constant 0 : i32
    %c0_i32_0 = arith.constant 0 : i32
    return %arg0, %c0_i32 : i32, i32
  }
  func.func @transform_1(%arg0: i32, %arg1: i32, %arg2: i32) -> (i32, i32, i32) {
    %c0_i32 = arith.constant 0 : i32
    %c0_i32_0 = arith.constant 0 : i32
    return %arg1, %arg0, %c0_i32 : i32, i32, i32
  }
  func.func @transform_2(%arg0: i32, %arg1: i32, %arg2: i32) -> (i32, i32, i32, i32) {
    %c0_i32 = arith.constant 0 : i32
    %c0_i32_0 = arith.constant 0 : i32
    %c0_i32_1 = arith.constant 0 : i32
    return %arg1, %arg2, %c0_i32, %c0_i32_0 : i32, i32, i32, i32
  }
  func.func @transform_3(%arg0: i32, %arg1: i32, %arg2: i32) -> (i32, i32, i32) {
    %c0_i32 = arith.constant 0 : i32
    %c0_i32_0 = arith.constant 0 : i32
    return %arg1, %arg2, %c0_i32 : i32, i32, i32
  }
  func.func @transform_4(%arg0: i32, %arg1: i32, %arg2: i32) -> (i32, i32) {
    %c0_i32 = arith.constant 0 : i32
    %c0_i32_0 = arith.constant 0 : i32
    return %arg0, %c0_i32 : i32, i32
  }
}

</mosaic_0001>

<bundles_post_ra>
// kernel: tpu_custom_call.1
= control target key start
LH: loop header
LB: loop body
LE: loop exit
PB: predicated region body
PF: predicated region fallthrough
CT: control target
= control target key end

     0   :  { %s2299_s15 = smov 0   ;;  %s2301_s16 = smov 0   ;;  %s2859_s0 = inlined_call_operand.vmem [shape: bf16[256,32], index: 0, kind: input, shape index: {}]   ;;  %s2860_s1 = inlined_call_operand.vmem [shape: f32[4,256,1], index: 1, kind: input, shape index: {}]   ;;  %s2861_s2 = inlined_call_operand.vmem [shape: bf16[4,1,32,96], index: 2, kind: input, shape index: {}]   ;;  %s2862_s3 = inlined_call_operand.vmem [shape: bf16[4,48,32], index: 3, kind: input, shape index: {}]   ;;  %s2863_s4 = inlined_call_operand.vmem [shape: f32[256,32], index: 4, kind: output, shape index: {}]  }
   0x1   :  { %s2303_s17 = smov 0  }
   0x2 LB: > { %s29_s18 = sadd.s32 1, %s2265_s16  ;;  %p1856_p0 = scmp.ge.s32.totalorder %s2269_s17, 1  ;;  %s2269_s17 = sphi %s2303_s17, %s14_s17   ;;  %s2265_s16 = sphi %s2301_s16, %s2865_s16   ;;  %s2261_s15 = sphi %s2299_s15, %s2864_s15  }
   0x3   : > { %p31_p1 = scmp.ge.s32.totalorder %s29_s18, 4  ;;  %p232_p2 = scmp.lt.s32.totalorder %s2269_s17, 5 }
   0x5   : > { %s2867_s18 = smov (%p31_p1, %s29_s18), 0  ;;  %p233_p3 = pnand %p1856_p0, %p232_p2 }
   0x6   : > { %p292_p4 = scmp.lt.s32.totalorder (!%p233_p3), %s2261_s15, 3  ;;  %p327_p5 = scmp.eq.s32.totalorder (!%p233_p3), %s2261_s15, 0 }
   0x7   : > { %236 = sbr.rel (%p233_p3) target bundleno = 663 (0x297), region = 36 }
   0xe   : > { %s293_s19 = scalar_select %p292_p4, %s2261_s15, 3 }
   0xf   : > { %332 = sbr.rel (!%p327_p5) target bundleno = 32 (0x20), region = 40  ;;  %vm333_vm0 = vcmask (%p327_p5), 261120   ;;  %v2271_v0 = vmov (%p327_p5), 0.0  }
  0x10   : > { %s1953_s20 = sshll.u32 %s293_s19, 8  ;;  %s1954_s21 = sshll.u32 %s293_s19, 4  ;;  %334 = vst.msk [vmem:[#allocation2] sm:$0xff] (%p327_p5), %vm333_vm0, %v2271_v0  ;;  %335 = vst.msk [vmem:[#allocation2 + $0x8] sm:$0xff] (%p327_p5), %vm333_vm0, %v2271_v0 }
  0x11   : > { %s2325_s24 = scalar_lea.vmem %s2860_s1, %s1953_s20  ;;  %s2330_s27 = scalar_lea.vmem %s2861_s2, %s1954_s21  ;;  %336 = vst.msk [vmem:[#allocation2 + $0x10] sm:$0xff] (%p327_p5), %vm333_vm0, %v2271_v0  ;;  %337 = vst.msk [vmem:[#allocation2 + $0x18] sm:$0xff] (%p327_p5), %vm333_vm0, %v2271_v0 }
  0x12   : > { %s2068_s28 = smul.u32 24, %s293_s19  ;;  %338 = vst.msk [vmem:[#allocation2 + $0x20] sm:$0xff] (%p327_p5), %vm333_vm0, %v2271_v0  ;;  %339 = vst.msk [vmem:[#allocation2 + $0x28] sm:$0xff] (%p327_p5), %vm333_vm0, %v2271_v0 }
  0x13   : > { %340 = vst.msk [vmem:[#allocation2 + $0x30] sm:$0xff] (%p327_p5), %vm333_vm0, %v2271_v0  ;;  %341 = vst.msk [vmem:[#allocation2 + $0x38] sm:$0xff] (%p327_p5), %vm333_vm0, %v2271_v0 }
  0x14   : > { %s2335_s5 = scalar_lea.vmem %s2862_s3, %s2068_s28  ;;  %342 = vst.msk [vmem:[#allocation2 + $0x40] sm:$0xff] (%p327_p5), %vm333_vm0, %v2271_v0  ;;  %343 = vst.msk [vmem:[#allocation2 + $0x48] sm:$0xff] (%p327_p5), %vm333_vm0, %v2271_v0 }
  0x15   : > { %344 = vst.msk [vmem:[#allocation2 + $0x50] sm:$0xff] (%p327_p5), %vm333_vm0, %v2271_v0  ;;  %345 = vst.msk [vmem:[#allocation2 + $0x58] sm:$0xff] (%p327_p5), %vm333_vm0, %v2271_v0 }
  0x16   : > { %346 = vst.msk [vmem:[#allocation2 + $0x60] sm:$0xff] %vm333_vm0, %v2271_v0  ;;  %347 = vst.msk [vmem:[#allocation2 + $0x68] sm:$0xff] %vm333_vm0, %v2271_v0 }
  0x17   : > { %348 = vst.msk [vmem:[#allocation2 + $0x70] sm:$0xff] %vm333_vm0, %v2271_v0  ;;  %349 = vst.msk [vmem:[#allocation2 + $0x78] sm:$0xff] %vm333_vm0, %v2271_v0 }
  0x18   : > { %350 = vst.msk [vmem:[#allocation2 + $0x80] sm:$0xff] %vm333_vm0, %v2271_v0  ;;  %351 = vst.msk [vmem:[#allocation2 + $0x88] sm:$0xff] %vm333_vm0, %v2271_v0 }
  0x19   : > { %352 = vst.msk [vmem:[#allocation2 + $0x90] sm:$0xff] %vm333_vm0, %v2271_v0  ;;  %353 = vst.msk [vmem:[#allocation2 + $0x98] sm:$0xff] %vm333_vm0, %v2271_v0 }
  0x1a   : > { %354 = vst.msk [vmem:[#allocation2 + $0xa0] sm:$0xff] %vm333_vm0, %v2271_v0  ;;  %355 = vst.msk [vmem:[#allocation2 + $0xa8] sm:$0xff] %vm333_vm0, %v2271_v0 }
  0x1b   : > { %356 = vst.msk [vmem:[#allocation2 + $0xb0] sm:$0xff] %vm333_vm0, %v2271_v0  ;;  %357 = vst.msk [vmem:[#allocation2 + $0xb8] sm:$0xff] %vm333_vm0, %v2271_v0 }
  0x1c   : > { %358 = vst.msk [vmem:[#allocation2 + $0xc0] sm:$0xff] %vm333_vm0, %v2271_v0  ;;  %359 = vst.msk [vmem:[#allocation2 + $0xc8] sm:$0xff] %vm333_vm0, %v2271_v0 }
  0x1d   : > { %360 = vst.msk [vmem:[#allocation2 + $0xd0] sm:$0xff] %vm333_vm0, %v2271_v0  ;;  %361 = vst.msk [vmem:[#allocation2 + $0xd8] sm:$0xff] %vm333_vm0, %v2271_v0 }
  0x1e   : > { %362 = vst.msk [vmem:[#allocation2 + $0xe0] sm:$0xff] %vm333_vm0, %v2271_v0  ;;  %363 = vst.msk [vmem:[#allocation2 + $0xe8] sm:$0xff] %vm333_vm0, %v2271_v0 }
  0x1f   : > { %364 = vst.msk [vmem:[#allocation2 + $0xf0] sm:$0xff] %vm333_vm0, %v2271_v0  ;;  %365 = vst.msk [vmem:[#allocation2 + $0xf8] sm:$0xff] %vm333_vm0, %v2271_v0 }
  0x20 PF: > { %v2098_v1 = vld [vmem:[%s2330_s27] sm:$0xff]   ;;  %v2099_v2 = vld [vmem:[%s2330_s27 + $0x8] sm:$0xff]   ;;  %vm494_vm1 = vcmask 261120   ;;  %v2102_v5 = vld [vmem:[%s2859_s0 + $0x10] sm:$0xff]   ;;  %s2272_s22 = smov 80   ;;  %v2273_v34 = vmov 0  }
  0x21   : > { %1994 = vmatprep.subr.bf16.mxu0 %v2098_v1  ;;  %v2100_v3 = vld [vmem:[%s2859_s0] sm:$0xff]   ;;  %v2101_v4 = vld [vmem:[%s2859_s0 + $0x8] sm:$0xff]   ;;  %v2103_v6 = vld [vmem:[%s2859_s0 + $0x18] sm:$0xff]   ;;  %2097 = vset.pattern.permute.xlu1 %v2273_v34  ;;  %vm1128_vm2 = vcmask 392192   ;;  %p1658_p6 = scmp.eq.s32.totalorder %s2261_s15, 3 }
  0x22   : > { %1995 = vmatpush3.bf16.msra.mxu0 %v2098_v1  ;;  %1998 = vmatprep.mubr.msk.bf16.mxu0 %vm494_vm1, %v2100_v3  ;;  %v2104_v7 = vld [vmem:[%s2859_s0 + $0x20] sm:$0xff]   ;;  %v2105_v8 = vld [vmem:[%s2859_s0 + $0x28] sm:$0xff]   ;;  %v2106_v9 = vld [vmem:[%s2859_s0 + $0x30] sm:$0xff]  }
  0x23   : > { %1996 = vmatprep.subr.bf16.mxu0 %v2099_v2  ;;  %v2107_v10 = vld [vmem:[%s2859_s0 + $0x38] sm:$0xff]   ;;  %v2108_v11 = vld [vmem:[%s2859_s0 + $0x40] sm:$0xff]   ;;  %v2109_v12 = vld [vmem:[%s2859_s0 + $0x48] sm:$0xff]   ;;  %2096 = vset.pattern.permute.xlu0 %v2273_v34 }
  0x24   : > { %v2110_v13 = vld [vmem:[%s2859_s0 + $0x50] sm:$0xff]   ;;  %v2111_v14 = vld [vmem:[%s2859_s0 + $0x58] sm:$0xff]   ;;  %v2112_v15 = vld [vmem:[%s2859_s0 + $0x60] sm:$0xff]  }
  0x25   : > { %v2113_v16 = vld [vmem:[%s2859_s0 + $0x68] sm:$0xff]   ;;  %v2114_v17 = vld [vmem:[%s2859_s0 + $0x70] sm:$0xff]   ;;  %v2115_v18 = vld [vmem:[%s2859_s0 + $0x78] sm:$0xff]  }
  0x26   : > { %1997 = vmatpush3.bf16.msra.mxu0 %v2099_v2  ;;  %v2116_v19 = vld [vmem:[%s2335_s5] sm:$0xff]   ;;  %v2117_v20 = vld [vmem:[%s2335_s5 + $0x8] sm:$0xff]   ;;  %v2118_v21 = vld [vmem:[%s2335_s5 + $0x10] sm:$0xff]  }
  0x27   : > { %2030 = vmatprep.subr.bf16.mxu1 %v2116_v19  ;;  %v1370_v55 = vld [vmem:[%s2325_s24] sm:$0xff]  ;;  %v1371_v56 = vld [vmem:[%s2325_s24 + $0x8] sm:$0xff]  ;;  %v1373_v57 = vld [vmem:[%s2325_s24 + $0x18] sm:$0xff] }
  0x28   : > { %2031 = vmatpush3.bf16.msra.mxu1 %v2116_v19  ;;  %v1372_v58 = vld [vmem:[%s2325_s24 + $0x10] sm:$0xff]  ;;  %v1375_v59 = vld [vmem:[%s2325_s24 + $0x28] sm:$0xff]  ;;  %v1374_v60 = vld [vmem:[%s2325_s24 + $0x20] sm:$0xff] }
  0x29   : > { %1999 = vmatmul.mubr.msk.bf16.vlgmr.msra.gmra.mrb[0].mxu0 %vm494_vm1, %v2101_v4  ;;  %2032 = vmatprep.subr.bf16.mxu1 %v2117_v20  ;;  %v1377_v61 = vld [vmem:[%s2325_s24 + $0x38] sm:$0xff]  ;;  %v1376_v62 = vld [vmem:[%s2325_s24 + $0x30] sm:$0xff]  ;;  %v1379_v0 = vld [vmem:[%s2325_s24 + $0x48] sm:$0xff] }
  0x2a   : > { %2002 = vmatprep.mubr.msk.bf16.mxu0 %vm494_vm1, %v2102_v5  ;;  %v1378_v2 = vld [vmem:[%s2325_s24 + $0x40] sm:$0xff]  ;;  %v1381_v4 = vld [vmem:[%s2325_s24 + $0x58] sm:$0xff] }
  0x2b   : > { %v1386_v34 = vld [vmem:[%s2325_s24 + $0x80] sm:$0xff] }
  0x2c   : > { %2033 = vmatpush3.bf16.msra.mxu1 %v2117_v20 }
  0x2d   : > { %2034 = vmatprep.subr.bf16.mxu1 %v2118_v21 }
  0x30   : > { %2035 = vmatpush3.bf16.msra.mxu1 %v2118_v21 }
  0x31   : > { %2003 = vmatmul.mubr.msk.bf16.gmra.mrb[4].mxu0 %vm494_vm1, %v2103_v6  ;;  %v1380_v6 = vld [vmem:[%s2325_s24 + $0x50] sm:$0xff] }
  0x32   : > { %2006 = vmatprep.mubr.msk.bf16.mxu0 %vm494_vm1, %v2104_v7  ;;  %v1383_v7 = vld [vmem:[%s2325_s24 + $0x68] sm:$0xff] }
  0x39   : > { %2007 = vmatmul.mubr.msk.bf16.gmra.mrb[8].mxu0 %vm494_vm1, %v2105_v8 }
  0x3a   : > { %2010 = vmatprep.mubr.msk.bf16.mxu0 %vm494_vm1, %v2106_v9  ;;  %v1382_v9 = vld [vmem:[%s2325_s24 + $0x60] sm:$0xff] }
  0x41   : > { %2011 = vmatmul.mubr.msk.bf16.gmra.mrb[12].mxu0 %vm494_vm1, %v2107_v10 }
  0x42   : > { %2014 = vmatprep.mubr.msk.bf16.mxu0 %vm494_vm1, %v2108_v11 }
  0x49   : > { %2015 = vmatmul.mubr.msk.bf16.gmra.mrb[16].mxu0 %vm494_vm1, %v2109_v12  ;;  %v1385_v12 = vld [vmem:[%s2325_s24 + $0x78] sm:$0xff] }
  0x4a   : > { %2018 = vmatprep.mubr.msk.bf16.mxu0 %vm494_vm1, %v2110_v13 }
  0x51   : > { %2019 = vmatmul.mubr.msk.bf16.gmra.mrb[20].mxu0 %vm494_vm1, %v2111_v14 }
  0x52   : > { %2022 = vmatprep.mubr.msk.bf16.mxu0 %vm494_vm1, %v2112_v15  ;;  %v1384_v15 = vld [vmem:[%s2325_s24 + $0x70] sm:$0xff] }
  0x59   : > { %2023 = vmatmul.mubr.msk.bf16.gmra.mrb[24].mxu0 %vm494_vm1, %v2113_v16 }
  0x5a   : > { %2026 = vmatprep.mubr.msk.bf16.mxu0 %vm494_vm1, %v2114_v17 }
  0x61   : > { %2027 = vmatmul.mubr.msk.bf16.gmra.mrb[28].mxu0 %vm494_vm1, %v2115_v18  ;;  %v1387_v18 = vld [vmem:[%s2325_s24 + $0x88] sm:$0xff] }
  0xfc   : > { %v2438_v22 = vpop.f32.mrb[0].mxu0 }
  0xfd   : > { %964 = vrot.lane.b32.xlu1 %v2438_v22, %s2272_s22  ;;  %v2442_v23 = vpop.f32.mrb[1].mxu0  ;;  %v1899_v63 = vmul.f32 -1.442695, %v2438_v22 }
  0xfe   : > { %960 = vrot.lane.b32.xlu0 %v2442_v23, %s2272_s22  ;;  %v2446_v24 = vpop.f32.mrb[2].mxu0  ;;  %v1897_v1 = vmul.f32 -1.442695, %v2442_v23 }
  0xff   : > { %v2448_v25 = vpop.f32.mrb[3].mxu0  ;;  %2119 = vpow2.f32 %v1899_v63  ;;  %v1900_v3 = vmul.f32 -1.442695, %v2446_v24 }
 0x100   : > { %2121 = vpow2.f32 %v1897_v1  ;;  %v1898_v5 = vmul.f32 -1.442695, %v2448_v25 }
 0x101   : > { %966 = vrot.lane.b32.xlu1 %v2446_v24, %s2272_s22  ;;  %2123 = vpow2.f32 %v1900_v3 }
 0x102   : > { %962 = vrot.lane.b32.xlu0 %v2448_v25, %s2272_s22  ;;  %2125 = vpow2.f32 %v1898_v5  ;;  %v1390_v5 = vld [vmem:[%s2325_s24 + $0xa0] sm:$0xff] }
 0x104   : > { %v2454_v26 = vpop.f32.mrb[4].mxu0 }
 0x105   : > { %v2456_v27 = vpop.f32.mrb[5].mxu0  ;;  %v1903_v8 = vmul.f32 -1.442695, %v2454_v26 }
 0x106   : > { %968 = vrot.lane.b32.xlu0 %v2456_v27, %s2272_s22  ;;  %v2460_v28 = vpop.f32.mrb[6].mxu0  ;;  %v1901_v10 = vmul.f32 -1.442695, %v2456_v27 }
 0x107   : > { %v2462_v29 = vpop.f32.mrb[7].mxu0  ;;  %2127 = vpow2.f32 %v1903_v8  ;;  %v1904_v14 = vmul.f32 -1.442695, %v2460_v28 }
 0x108   : > { %970 = vrot.lane.b32.xlu1 %v2462_v29, %s2272_s22  ;;  %v1902_v11 = vmul.f32 -1.442695, %v2462_v29  ;;  %2129 = vpow2.f32 %v1901_v10 }
 0x109   : > { %v2120_v13 = vpop.eup %2119 }
 0x10a   : > { %972 = vrot.lane.b32.xlu0 %v2454_v26, %s2272_s22  ;;  %v2122_v16 = vpop.eup %2121  ;;  %v802_v17 = vadd.f32 1.0, %v2120_v13  ;;  %2131 = vpow2.f32 %v1902_v11  ;;  %v1392_v13 = vld [vmem:[%s2325_s24 + $0xb0] sm:$0xff] }
 0x10b   : > { %v2124_v19 = vpop.eup %2123  ;;  %2133 = vpow2.f32 %v1904_v14 }
 0x10c   : > { %974 = vrot.lane.b32.xlu1 %v2460_v28, %s2272_s22  ;;  %v2470_v30 = vpop.f32.mrb[8].mxu0  ;;  %2135 = vrcp.f32 %v802_v17 }
 0x10d   : > { %v2472_v31 = vpop.f32.mrb[9].mxu0 }
 0x10e   : > { %976 = vrot.lane.b32.xlu0 %v2472_v31, %s2272_s22  ;;  %v2476_v32 = vpop.f32.mrb[10].mxu0  ;;  %v1905_v20 = vmul.f32 -1.442695, %v2472_v31 }
 0x10f   : > { %v2478_v33 = vpop.f32.mrb[11].mxu0 }
 0x110   : > { %978 = vrot.lane.b32.xlu1 %v2478_v33, %s2272_s22  ;;  %v1906_v21 = vmul.f32 -1.442695, %v2478_v33  ;;  %2137 = vpow2.f32 %v1905_v20 }
 0x112   : > { %980 = vrot.lane.b32.xlu0 %v2470_v30, %s2272_s22  ;;  %2139 = vpow2.f32 %v1906_v21 }
 0x114   : > { %982 = vrot.lane.b32.xlu1 %v2476_v32, %s2272_s22  ;;  %v2486_v35 = vpop.f32.mrb[12].mxu0 }
 0x115   : > { %v2488_v36 = vpop.f32.mrb[13].mxu0 }
 0x116   : > { %984 = vrot.lane.b32.xlu0 %v2488_v36, %s2272_s22  ;;  %v2492_v37 = vpop.f32.mrb[14].mxu0 }
 0x117   : > { %v2494_v38 = vpop.f32.mrb[15].mxu0  ;;  %v1912_v17 = vmul.f32 -1.442695, %v2492_v37 }
 0x118   : > { %986 = vrot.lane.b32.xlu1 %v2494_v38, %s2272_s22 }
 0x11a   : > { %988 = vrot.lane.b32.xlu0 %v2486_v35, %s2272_s22 }
 0x11c   : > { %990 = vrot.lane.b32.xlu1 %v2492_v37, %s2272_s22  ;;  %v2502_v39 = vpop.f32.mrb[16].mxu0 }
 0x11d   : > { %v2504_v40 = vpop.f32.mrb[17].mxu0 }
 0x11e   : > { %992 = vrot.lane.b32.xlu0 %v2504_v40, %s2272_s22  ;;  %v2508_v41 = vpop.f32.mrb[18].mxu0  ;;  %v1913_v20 = vmul.f32 -1.442695, %v2504_v40 }
 0x11f   : > { %v2510_v42 = vpop.f32.mrb[19].mxu0 }
 0x120   : > { %994 = vrot.lane.b32.xlu1 %v2510_v42, %s2272_s22 }
 0x122   : > { %996 = vrot.lane.b32.xlu0 %v2502_v39, %s2272_s22 }
 0x124   : > { %998 = vrot.lane.b32.xlu1 %v2508_v41, %s2272_s22  ;;  %v2518_v43 = vpop.f32.mrb[20].mxu0 }
 0x125   : > { %v2520_v44 = vpop.f32.mrb[21].mxu0 }
 0x126   : > { %1000 = vrot.lane.b32.xlu0 %v2520_v44, %s2272_s22  ;;  %v2524_v45 = vpop.f32.mrb[22].mxu0 }
 0x127   : > { %v2526_v46 = vpop.f32.mrb[23].mxu0 }
 0x128   : > { %1002 = vrot.lane.b32.xlu1 %v2526_v46, %s2272_s22 }
 0x12a   : > { %1004 = vrot.lane.b32.xlu0 %v2518_v43, %s2272_s22 }
 0x12c   : > { %1006 = vrot.lane.b32.xlu1 %v2524_v45, %s2272_s22  ;;  %v2534_v47 = vpop.f32.mrb[24].mxu0 }
 0x12d   : > { %v2536_v48 = vpop.f32.mrb[25].mxu0 }
 0x12e   : > { %1008 = vrot.lane.b32.xlu0 %v2536_v48, %s2272_s22  ;;  %v2540_v49 = vpop.f32.mrb[26].mxu0 }
 0x12f   : > { %v2542_v50 = vpop.f32.mrb[27].mxu0 }
 0x130   : > { %1010 = vrot.lane.b32.xlu1 %v2542_v50, %s2272_s22 }
 0x132   : > { %1012 = vrot.lane.b32.xlu0 %v2534_v47, %s2272_s22 }
 0x134   : > { %1014 = vrot.lane.b32.xlu1 %v2540_v49, %s2272_s22  ;;  %v2550_v51 = vpop.f32.mrb[28].mxu0 }
 0x135   : > { %v2552_v52 = vpop.f32.mrb[29].mxu0 }
 0x136   : > { %1016 = vrot.lane.b32.xlu0 %v2552_v52, %s2272_s22  ;;  %v2556_v53 = vpop.f32.mrb[30].mxu0 }
 0x137   : > { %v2558_v54 = vpop.f32.mrb[31].mxu0 }
 0x138   : > { %1018 = vrot.lane.b32.xlu1 %v2558_v54, %s2272_s22 }
 0x13a   : > { %1020 = vrot.lane.b32.xlu0 %v2550_v51, %s2272_s22 }
 0x13c   : > { %1022 = vrot.lane.b32.xlu1 %v2556_v53, %s2272_s22 }
 0x13e   : > { %1404 = vperm.xlu0 %2096, %v1370_v55   ;;  %v800_v55 = vadd.f32 1.0, %v2122_v16 }
 0x140   : > { %1409 = vperm.xlu1 %2097, %v1371_v56   ;;  %v2126_v56 = vpop.eup %2125  ;;  %2141 = vrcp.f32 %v800_v55  ;;  %v1394_v55 = vld [vmem:[%s2325_s24 + $0xc0] sm:$0xff] }
 0x141   : > { %v2128_v63 = vpop.eup %2127 }
 0x142   : > { %1419 = vperm.xlu0 %2096, %v1373_v57   ;;  %v803_v57 = vadd.f32 1.0, %v2124_v19  ;;  %v2130_v1 = vpop.eup %2129 }
 0x143   : > { %v2132_v3 = vpop.eup %2131  ;;  %v804_v8 = vadd.f32 1.0, %v2130_v1 }
 0x144   : > { %1414 = vperm.xlu1 %2097, %v1372_v58   ;;  %v1389_v58 = vld [vmem:[%s2325_s24 + $0x98] sm:$0xff]  ;;  %2143 = vrcp.f32 %v803_v57  ;;  %v805_v10 = vadd.f32 1.0, %v2132_v3 }
 0x146   : > { %1429 = vperm.xlu0 %2096, %v1375_v59   ;;  %v1907_v59 = vmul.f32 -1.442695, %v2470_v30 }
 0x148   : > { %1424 = vperm.xlu1 %2097, %v1374_v60   ;;  %v1908_v60 = vmul.f32 -1.442695, %v2476_v32  ;;  %2145 = vpow2.f32 %v1907_v59  ;;  %v1914_v59 = vmul.f32 -1.442695, %v2510_v42 }
 0x14a   : > { %1439 = vperm.xlu0 %2096, %v1377_v61   ;;  %v1388_v61 = vld [vmem:[%s2325_s24 + $0x90] sm:$0xff]  ;;  %2147 = vpow2.f32 %v1908_v60 }
 0x14c   : > { %1434 = vperm.xlu1 %2097, %v1376_v62   ;;  %v801_v62 = vadd.f32 1.0, %v2126_v56 }
 0x14e   : > { %1449 = vperm.xlu0 %2096, %v1379_v0   ;;  %v1391_v0 = vld [vmem:[%s2325_s24 + $0xa8] sm:$0xff]  ;;  %2149 = vrcp.f32 %v801_v62 }
 0x150   : > { %1444 = vperm.xlu1 %2097, %v1378_v2   ;;  %v1909_v2 = vmul.f32 -1.442695, %v2488_v36 }
 0x152   : > { %1459 = vperm.xlu0 %2096, %v1381_v4   ;;  %v1910_v4 = vmul.f32 -1.442695, %v2494_v38  ;;  %2151 = vpow2.f32 %v1909_v2  ;;  %v1396_v2 = vld [vmem:[%s2325_s24 + $0xd0] sm:$0xff] }
 0x154   : > { %1454 = vperm.xlu1 %2097, %v1380_v6   ;;  %v806_v6 = vadd.f32 1.0, %v2128_v63  ;;  %2153 = vpow2.f32 %v1910_v4  ;;  %v1915_v63 = vmul.f32 -1.442695, %v2502_v39 }
 0x156   : > { %1469 = vperm.xlu0 %2096, %v1383_v7   ;;  %v2134_v7 = vpop.eup %2133  ;;  %2155 = vrcp.f32 %v806_v6 }
 0x157   : > { %v2136_v11 = vpop.eup %2135  ;;  %2157 = vrcp.f32 %v804_v8  ;;  %v1916_v8 = vmul.f32 -1.442695, %v2508_v41 }
 0x158   : > { %1464 = vperm.xlu1 %2097, %v1382_v9   ;;  %v1393_v9 = vld [vmem:[%s2325_s24 + $0xb8] sm:$0xff]  ;;  %v2138_v14 = vpop.eup %2137  ;;  %2159 = vrcp.f32 %v805_v10 }
 0x159   : > { %v2140_v16 = vpop.eup %2139 }
 0x15a   : > { %1479 = vperm.xlu0 %2096, %v1385_v12   ;;  %v1911_v12 = vmul.f32 -1.442695, %v2486_v35  ;;  %v2142_v19 = vpop.eup %2141  ;;  %v809_v57 = vadd.f32 1.0, %v2140_v16 }
 0x15b   : > { %v2144_v21 = vpop.eup %2143 }
 0x15c   : > { %1474 = vperm.xlu1 %2097, %v1384_v15   ;;  %v807_v15 = vadd.f32 1.0, %v2134_v7  ;;  %2161 = vpow2.f32 %v1911_v12  ;;  %v2146_v56 = vpop.eup %2145  ;;  %v899_v6 = vmul.f32 %v2144_v21, %v2446_v24 }
 0x15d   : > { %v810_v1 = vadd.f32 1.0, %v2146_v56 }
 0x15e   : > { %1489 = vperm.xlu0 %2096, %v1387_v18   ;;  %v1395_v18 = vld [vmem:[%s2325_s24 + $0xc8] sm:$0xff]  ;;  %2163 = vrcp.f32 %v807_v15  ;;  %v1917_v15 = vmul.f32 -1.442695, %v2520_v44 }
 0x15f   : > { %2165 = vpow2.f32 %v1912_v17 }
 0x160   : > { %1484 = vperm.xlu1 %2097, %v1386_v34   ;;  %v808_v34 = vadd.f32 1.0, %v2138_v14  ;;  %2167 = vpow2.f32 %v1913_v20 }
 0x162   : > { %1499 = vperm.xlu0 %2096, %v1389_v58   ;;  %v2148_v58 = vpop.eup %2147  ;;  %2169 = vrcp.f32 %v808_v34 }
 0x163   : > { %v2150_v62 = vpop.eup %2149  ;;  %v811_v4 = vadd.f32 1.0, %v2148_v58  ;;  %2171 = vrcp.f32 %v809_v57  ;;  %v1401_v57 = vld [vmem:[%s2325_s24 + $0xf8] sm:$0xff] }
 0x164   : > { %1494 = vperm.xlu1 %2097, %v1388_v61   ;;  %v1397_v61 = vld [vmem:[%s2325_s24 + $0xd8] sm:$0xff]  ;;  %v2152_v3 = vpop.eup %2151  ;;  %2173 = vpow2.f32 %v1914_v59  ;;  %v897_v12 = vmul.f32 %v2150_v62, %v2448_v25  ;;  %v1919_v59 = vmul.f32 -1.442695, %v2518_v43 }
 0x165   : > { %v2154_v7 = vpop.eup %2153  ;;  %2175 = vpow2.f32 %v1915_v63  ;;  %v812_v17 = vadd.f32 1.0, %v2152_v3 }
 0x166   : > { %1509 = vperm.xlu0 %2096, %v1391_v0   ;;  %v2156_v14 = vpop.eup %2155  ;;  %2177 = vrcp.f32 %v810_v1  ;;  %v813_v21 = vadd.f32 1.0, %v2154_v7 }
 0x167   : > { %v2158_v24 = vpop.eup %2157  ;;  %2179 = vrcp.f32 %v811_v4 }
 0x168   : > { %1504 = vperm.xlu1 %2097, %v1390_v5   ;;  %v898_v5 = vmul.f32 %v2136_v11, %v2438_v22  ;;  %2181 = vpow2.f32 %v1916_v8  ;;  %v900_v62 = vmul.f32 %v2158_v24, %v2456_v27 }
 0x169   : > { %2183 = vpow2.f32 %v1917_v15 }
 0x16a   : > { %1519 = vperm.xlu0 %2096, %v1393_v9   ;;  %v896_v9 = vmul.f32 %v2142_v19, %v2442_v23  ;;  %v1398_v23 = vld [vmem:[%s2325_s24 + $0xe0] sm:$0xff]  ;;  %v2160_v19 = vpop.eup %2159  ;;  %2185 = vrcp.f32 %v812_v17  ;;  %v1922_v17 = vmul.f32 -1.442695, %v2542_v50 }
 0x16b   : > { %v2162_v34 = vpop.eup %2161  ;;  %v901_v63 = vmul.f32 %v2160_v19, %v2462_v29  ;;  %2187 = vrcp.f32 %v813_v21 }
 0x16c   : > { %1514 = vperm.xlu1 %2097, %v1392_v13   ;;  %v1399_v13 = vld [vmem:[%s2325_s24 + $0xe8] sm:$0xff]  ;;  %v2164_v58 = vpop.eup %2163 }
 0x16d   : > { %v903_v15 = vmul.f32 %v2164_v58, %v2460_v28 }
 0x16e   : > { %1529 = vperm.xlu0 %2096, %v1395_v18  }
 0x16f   : > { %v965_v60 = vpop.permute.xlu1 %964 }
 0x170   : > { %v961_v0 = vpop.permute.xlu0 %960  ;;  %1524 = vperm.xlu1 %2097, %v1394_v55   ;;  %v1058_v16 = vmul.f32 %v965_v60, %v898_v5  ;;  %v1918_v55 = vmul.f32 -1.442695, %v2526_v46  ;;  %v1920_v5 = vmul.f32 -1.442695, %v2524_v45 }
 0x171   : > { %v1056_v18 = vmul.f32 %v961_v0, %v896_v9  ;;  %v1400_v0 = vld [vmem:[%s2325_s24 + $0xf0] sm:$0xff] }
 0x172   : > { %1539 = vperm.xlu0 %2096, %v1397_v61   ;;  %v2166_v61 = vpop.eup %2165  ;;  %2189 = vpow2.f32 %v1918_v55 }
 0x173   : > { %v967_v10 = vpop.permute.xlu1 %966  ;;  %v2168_v1 = vpop.eup %2167  ;;  %v815_v27 = vadd.f32 1.0, %v2166_v61  ;;  %2191 = vpow2.f32 %v1919_v59  ;;  %v1924_v59 = vmul.f32 -1.442695, %v2540_v49 }
 0x174   : > { %v1059_v22 = vmul.f32 %v967_v10, %v899_v6  ;;  %v963_v11 = vpop.permute.xlu0 %962  ;;  %1534 = vperm.xlu1 %2097, %v1396_v2   ;;  %v814_v2 = vadd.f32 1.0, %v2162_v34  ;;  %v2170_v4 = vpop.eup %2169  ;;  %v816_v10 = vadd.f32 1.0, %v2168_v1 }
 0x175   : > { %v1057_v20 = vmul.f32 %v963_v11, %v897_v12  ;;  %v2172_v8 = vpop.eup %2171 }
 0x176   : > { %v1089_v25 = vpack.c.bf16 %v1059_v22, %v1058_v16  ;;  %1549 = vperm.xlu0 %2096, %v1399_v13   ;;  %v2174_v29 = vpop.eup %2173  ;;  %v902_v13 = vmul.f32 %v2156_v14, %v2454_v26  ;;  %2193 = vrcp.f32 %v814_v2  ;;  %v1921_v22 = vmul.f32 -1.442695, %v2536_v48 }
 0x177   : > { %v1088_v56 = vpack.c.bf16 %v1057_v20, %v1056_v18  ;;  %v2176_v16 = vpop.eup %2175  ;;  %2195 = vpow2.f32 %v1920_v5  ;;  %v817_v19 = vadd.f32 1.0, %v2174_v29  ;;  %v904_v26 = vmul.f32 %v2170_v4, %v2472_v31 }
 0x178   : > { %v969_v60 = vpop.permute.xlu0 %968  ;;  %1544 = vperm.xlu1 %2097, %v1398_v23   ;;  %v2178_v24 = vpop.eup %2177  ;;  %2197 = vrcp.f32 %v815_v27  ;;  %v818_v14 = vadd.f32 1.0, %v2176_v16  ;;  %v905_v34 = vmul.f32 %v2172_v8, %v2478_v33  ;;  %v1925_v5 = vmul.f32 -1.442695, %v2552_v52 }
 0x179   : > { %2036 = vmatprep.mubr.msk.bf16.mxu1 %vm1128_vm2, %v1088_v56  ;;  %v1060_v6 = vmul.f32 %v969_v60, %v900_v62  ;;  %v2180_v23 = vpop.eup %2179  ;;  %2199 = vrcp.f32 %v816_v10  ;;  %v1923_v56 = vmul.f32 -1.442695, %v2534_v47 }
 0x17a   : > { %2037 = vmatmul.mubr.msk.bf16.vlgmr.msra.gmra.mrb[0].mxu1 %vm1128_vm2, %v1089_v25  ;;  %v971_v3 = vpop.permute.xlu1 %970  ;;  %1559 = vperm.xlu0 %2096, %v1401_v57   ;;  %v2182_v28 = vpop.eup %2181  ;;  %2201 = vpow2.f32 %v1921_v22  ;;  %v1927_v22 = vmul.f32 -1.442695, %v2550_v51 }
 0x17b   : > { %v1061_v7 = vmul.f32 %v971_v3, %v901_v63  ;;  %v2184_v55 = vpop.eup %2183  ;;  %2203 = vpow2.f32 %v1922_v17  ;;  %v819_v62 = vadd.f32 1.0, %v2182_v28  ;;  %v906_v63 = vmul.f32 %v2178_v24, %v2470_v30 }
 0x17c   : > { %v973_v9 = vpop.permute.xlu0 %972  ;;  %1554 = vperm.xlu1 %2097, %v1400_v0   ;;  %v2186_v58 = vpop.eup %2185  ;;  %2205 = vrcp.f32 %v817_v19  ;;  %v820_v1 = vadd.f32 1.0, %v2184_v55  ;;  %v907_v3 = vmul.f32 %v2180_v23, %v2476_v32  ;;  %v1928_v17 = vmul.f32 -1.442695, %v2556_v53 }
 0x17d   : > { %v1090_v12 = vpack.c.bf16 %v1061_v7, %v1060_v6  ;;  %v1062_v18 = vmul.f32 %v973_v9, %v902_v13  ;;  %v2188_v31 = vpop.eup %2187  ;;  %2207 = vrcp.f32 %v818_v14  ;;  %v1926_v7 = vmul.f32 -1.442695, %v2558_v54 }
 0x17e   : > { %v975_v11 = vpop.permute.xlu1 %974  ;;  %v2190_v33 = vpop.eup %2189  ;;  %2209 = vpow2.f32 %v1923_v56  ;;  %v908_v10 = vmul.f32 %v2186_v58, %v2488_v36 }
 0x17f   : > { %v1063_v20 = vmul.f32 %v975_v11, %v903_v15  ;;  %2040 = vmatprep.mubr.msk.bf16.mxu1 %vm1128_vm2, %v1090_v12  ;;  %v2192_v4 = vpop.eup %2191  ;;  %2211 = vpow2.f32 %v1924_v59  ;;  %v821_v9 = vadd.f32 1.0, %v2190_v33  ;;  %v909_v15 = vmul.f32 %v2188_v31, %v2494_v38 }
 0x180   : > { %v977_v21 = vpop.permute.xlu0 %976  ;;  %v2194_v30 = vpop.eup %2193  ;;  %2213 = vrcp.f32 %v819_v62  ;;  %v822_v32 = vadd.f32 1.0, %v2192_v4 }
 0x181   : > { %v1091_v25 = vpack.c.bf16 %v1063_v20, %v1062_v18  ;;  %v1064_v60 = vmul.f32 %v977_v21, %v904_v26  ;;  %v2196_v12 = vpop.eup %2195  ;;  %2215 = vrcp.f32 %v820_v1  ;;  %v910_v26 = vmul.f32 %v2194_v30, %v2486_v35 }
 0x182   : > { %v979_v57 = vpop.permute.xlu1 %978  ;;  %v2198_v16 = vpop.eup %2197  ;;  %2217 = vpow2.f32 %v1925_v5  ;;  %v823_v23 = vadd.f32 1.0, %v2196_v12 }
 0x183   : > { %v1065_v61 = vmul.f32 %v979_v57, %v905_v34  ;;  %2041 = vmatmul.mubr.msk.bf16.gmra.mrb[4].mxu1 %vm1128_vm2, %v1091_v25  ;;  %v2200_v24 = vpop.eup %2199  ;;  %2219 = vpow2.f32 %v1926_v7  ;;  %v911_v28 = vmul.f32 %v2198_v16, %v2492_v37 }
 0x184   : > { %v981_v0 = vpop.permute.xlu0 %980  ;;  %v2202_v36 = vpop.eup %2201  ;;  %2221 = vrcp.f32 %v821_v9  ;;  %v912_v35 = vmul.f32 %v2200_v24, %v2504_v40 }
 0x185   : > { %v1092_v2 = vpack.c.bf16 %v1065_v61, %v1064_v60  ;;  %v1066_v8 = vmul.f32 %v981_v0, %v906_v63  ;;  %v2204_v21 = vpop.eup %2203  ;;  %2223 = vrcp.f32 %v822_v32  ;;  %v824_v55 = vadd.f32 1.0, %v2202_v36 }
 0x186   : > { %v983_v6 = vpop.permute.xlu1 %982  ;;  %v2206_v14 = vpop.eup %2205  ;;  %2225 = vpow2.f32 %v1927_v22  ;;  %v825_v59 = vadd.f32 1.0, %v2204_v21 }
 0x187   : > { %v1067_v27 = vmul.f32 %v983_v6, %v907_v3  ;;  %2044 = vmatprep.mubr.msk.bf16.mxu1 %vm1128_vm2, %v1092_v2  ;;  %v2208_v34 = vpop.eup %2207  ;;  %2227 = vpow2.f32 %v1928_v17  ;;  %v913_v37 = vmul.f32 %v2206_v14, %v2510_v42 }
 0x188   : > { %v985_v29 = vpop.permute.xlu0 %984  ;;  %v2210_v58 = vpop.eup %2209  ;;  %2229 = vrcp.f32 %v823_v23 }
 0x189   : > { %v1093_v13 = vpack.c.bf16 %v1067_v27, %v1066_v8  ;;  %v1068_v18 = vmul.f32 %v985_v29, %v908_v10  ;;  %v2212_v61 = vpop.eup %2211  ;;  %v826_v33 = vadd.f32 1.0, %v2210_v58  ;;  %2231 = vrcp.f32 %v824_v55 }
 0x18a   : > { %v987_v11 = vpop.permute.xlu1 %986  ;;  %v2214_v62 = vpop.eup %2213  ;;  %v827_v4 = vadd.f32 1.0, %v2212_v61  ;;  %2233 = vrcp.f32 %v825_v59  ;;  %v914_v8 = vmul.f32 %v2208_v34, %v2502_v39 }
 0x18b   : > { %v1069_v20 = vmul.f32 %v987_v11, %v909_v15  ;;  %2045 = vmatmul.mubr.msk.bf16.gmra.mrb[8].mxu1 %vm1128_vm2, %v1093_v13  ;;  %v2216_v0 = vpop.eup %2215  ;;  %v915_v40 = vmul.f32 %v2214_v62, %v2508_v41  ;;  %2235 = vrcp.f32 %v826_v33 }
 0x18c   : > { %v989_v19 = vpop.permute.xlu0 %988  ;;  %v2218_v3 = vpop.eup %2217  ;;  %2237 = vrcp.f32 %v827_v4  ;;  %v916_v22 = vmul.f32 %v2216_v0, %v2520_v44 }
 0x18d   : > { %v1094_v38 = vpack.c.bf16 %v1069_v20, %v1068_v18  ;;  %v1070_v56 = vmul.f32 %v989_v19, %v910_v26  ;;  %v2220_v6 = vpop.eup %2219  ;;  %v828_v9 = vadd.f32 1.0, %v2218_v3 }
 0x18e   : > { %v991_v25 = vpop.permute.xlu1 %990  ;;  %v2222_v42 = vpop.eup %2221  ;;  %v829_v32 = vadd.f32 1.0, %v2220_v6 }
 0x18f   : > { %v1071_v57 = vmul.f32 %v991_v25, %v911_v28  ;;  %2048 = vmatprep.mubr.msk.bf16.mxu1 %vm1128_vm2, %v1094_v38  ;;  %v2224_v30 = vpop.eup %2223  ;;  %v917_v39 = vmul.f32 %v2222_v42, %v2526_v46  ;;  %2239 = vrcp.f32 %v828_v9 }
 0x190   : > { %v993_v60 = vpop.permute.xlu0 %992  ;;  %v2226_v12 = vpop.eup %2225  ;;  %2241 = vrcp.f32 %v829_v32  ;;  %v918_v21 = vmul.f32 %v2224_v30, %v2518_v43 }
 0x191   : > { %v1095_v31 = vpack.c.bf16 %v1071_v57, %v1070_v56  ;;  %v1072_v1 = vmul.f32 %v993_v60, %v912_v35  ;;  %v2228_v15 = vpop.eup %2227  ;;  %v830_v24 = vadd.f32 1.0, %v2226_v12 }
 0x192   : > { %v995_v63 = vpop.permute.xlu1 %994  ;;  %v2230_v41 = vpop.eup %2229  ;;  %v831_v20 = vadd.f32 1.0, %v2228_v15 }
 0x193   : > { %v1073_v2 = vmul.f32 %v995_v63, %v913_v37  ;;  %2049 = vmatmul.mubr.msk.bf16.gmra.mrb[12].mxu1 %vm1128_vm2, %v1095_v31  ;;  %v2232_v23 = vpop.eup %2231  ;;  %v919_v38 = vmul.f32 %v2230_v41, %v2524_v45  ;;  %2243 = vrcp.f32 %v830_v24  ;;  %v1338_v24 = vld [vmem:[#allocation2] sm:$0xff] }
 0x194   : > { %v997_v5 = vpop.permute.xlu0 %996  ;;  %v2234_v44 = vpop.eup %2233  ;;  %2245 = vrcp.f32 %v831_v20  ;;  %v920_v55 = vmul.f32 %v2232_v23, %v2536_v48  ;;  %v1341_v20 = vld [vmem:[#allocation2 + $0x18] sm:$0xff] }
 0x195   : > { %v1096_v7 = vpack.c.bf16 %v1073_v2, %v1072_v1  ;;  %v1074_v29 = vmul.f32 %v997_v5, %v914_v8  ;;  %v2236_v25 = vpop.eup %2235  ;;  %v921_v56 = vmul.f32 %v2234_v44, %v2542_v50 }
 0x196   : > { %v999_v27 = vpop.permute.xlu1 %998  ;;  %v2238_v57 = vpop.eup %2237  ;;  %v922_v31 = vmul.f32 %v2236_v25, %v2534_v47 }
 0x197   : > { %v1075_v10 = vmul.f32 %v999_v27, %v915_v40  ;;  %2052 = vmatprep.mubr.msk.bf16.mxu1 %vm1128_vm2, %v1096_v7  ;;  %v923_v35 = vmul.f32 %v2238_v57, %v2540_v49 }
 0x198   : > { %v1001_v13 = vpop.permute.xlu0 %1000 }
 0x199   : > { %v1097_v16 = vpack.c.bf16 %v1075_v10, %v1074_v29  ;;  %v1076_v17 = vmul.f32 %v1001_v13, %v916_v22  ;;  %v2240_v60 = vpop.eup %2239 }
 0x19a   : > { %v1003_v11 = vpop.permute.xlu1 %1002  ;;  %v2242_v37 = vpop.eup %2241  ;;  %v924_v2 = vmul.f32 %v2240_v60, %v2552_v52  ;;  %v1345_v60 = vld [vmem:[#allocation2 + $0x38] sm:$0xff] }
 0x19b   : > { %v1077_v18 = vmul.f32 %v1003_v11, %v917_v39  ;;  %2053 = vmatmul.mubr.msk.bf16.gmra.mrb[16].mxu1 %vm1128_vm2, %v1097_v16  ;;  %v925_v33 = vmul.f32 %v2242_v37, %v2558_v54  ;;  %v1340_v39 = vld [vmem:[#allocation2 + $0x10] sm:$0xff]  ;;  %v1343_v37 = vld [vmem:[#allocation2 + $0x28] sm:$0xff] }
 0x19c   : > { %v1005_v36 = vpop.permute.xlu0 %1004 }
 0x19d   : > { %v1098_v19 = vpack.c.bf16 %v1077_v18, %v1076_v17  ;;  %v1078_v46 = vmul.f32 %v1005_v36, %v918_v21  ;;  %v2244_v50 = vpop.eup %2243 }
 0x19e   : > { %v1007_v26 = vpop.permute.xlu1 %1006  ;;  %v2246_v3 = vpop.eup %2245  ;;  %v926_v7 = vmul.f32 %v2244_v50, %v2550_v51 }
 0x19f   : > { %v1079_v28 = vmul.f32 %v1007_v26, %v919_v38  ;;  %2056 = vmatprep.mubr.msk.bf16.mxu1 %vm1128_vm2, %v1098_v19  ;;  %v927_v8 = vmul.f32 %v2246_v3, %v2556_v53  ;;  %v1339_v38 = vld [vmem:[#allocation2 + $0x8] sm:$0xff] }
 0x1a0   : > { %v1009_v14 = vpop.permute.xlu0 %1008 }
 0x1a1   : > { %v1099_v34 = vpack.c.bf16 %v1079_v28, %v1078_v46  ;;  %v1080_v43 = vmul.f32 %v1009_v14, %v920_v55  ;;  %v1344_v55 = vld [vmem:[#allocation2 + $0x30] sm:$0xff] }
 0x1a2   : > { %v1011_v58 = vpop.permute.xlu1 %1010 }
 0x1a3   : > { %v1081_v59 = vmul.f32 %v1011_v58, %v921_v56  ;;  %2057 = vmatmul.mubr.msk.bf16.gmra.mrb[20].mxu1 %vm1128_vm2, %v1099_v34  ;;  %v1342_v58 = vld [vmem:[#allocation2 + $0x20] sm:$0xff] }
 0x1a4   : > { %v1013_v45 = vpop.permute.xlu0 %1012 }
 0x1a5   : > { %v1100_v61 = vpack.c.bf16 %v1081_v59, %v1080_v43  ;;  %v1082_v63 = vmul.f32 %v1013_v45, %v922_v31 }
 0x1a6   : > { %v1015_v62 = vpop.permute.xlu1 %1014 }
 0x1a7   : > { %v1083_v0 = vmul.f32 %v1015_v62, %v923_v35  ;;  %2060 = vmatprep.mubr.msk.bf16.mxu1 %vm1128_vm2, %v1100_v61 }
 0x1a8   : > { %v1017_v48 = vpop.permute.xlu0 %1016 }
 0x1a9   : > { %v1101_v1 = vpack.c.bf16 %v1083_v0, %v1082_v63  ;;  %v1084_v5 = vmul.f32 %v1017_v48, %v924_v2  ;;  %v1348_v2 = vld [vmem:[#allocation2 + $0x50] sm:$0xff] }
 0x1aa   : > { %v1019_v4 = vpop.permute.xlu1 %1018 }
 0x1ab   : > { %v1085_v47 = vmul.f32 %v1019_v4, %v925_v33  ;;  %2061 = vmatmul.mubr.msk.bf16.gmra.mrb[24].mxu1 %vm1128_vm2, %v1101_v1 }
 0x1ac   : > { %v1021_v49 = vpop.permute.xlu0 %1020 }
 0x1ad   : > { %v1102_v6 = vpack.c.bf16 %v1085_v47, %v1084_v5  ;;  %v1086_v42 = vmul.f32 %v1021_v49, %v926_v7  ;;  %v1346_v5 = vld [vmem:[#allocation2 + $0x40] sm:$0xff] }
 0x1ae   : > { %v1023_v40 = vpop.permute.xlu1 %1022 }
 0x1af   : > { %v1087_v27 = vmul.f32 %v1023_v40, %v927_v8  ;;  %2064 = vmatprep.mubr.msk.bf16.mxu1 %vm1128_vm2, %v1102_v6  ;;  %v1349_v6 = vld [vmem:[#allocation2 + $0x58] sm:$0xff] }
 0x1b1   : > { %v1103_v54 = vpack.c.bf16 %v1087_v27, %v1086_v42  ;;  %v1347_v42 = vld [vmem:[#allocation2 + $0x48] sm:$0xff] }
 0x1b3   : > { %2065 = vmatmul.mubr.msk.bf16.gmra.mrb[28].mxu1 %vm1128_vm2, %v1103_v54 }
 0x1bd   : > { %v1405_v30 = vpop.permute.xlu0 %1404 }
 0x1bf   : > { %v1410_v52 = vpop.permute.xlu1 %1409 }
 0x1c1   : > { %v1420_v29 = vpop.permute.xlu0 %1419 }
 0x1c3   : > { %v1415_v9 = vpop.permute.xlu1 %1414 }
 0x1c5   : > { %v1430_v12 = vpop.permute.xlu0 %1429 }
 0x1c7   : > { %v1425_v10 = vpop.permute.xlu1 %1424 }
 0x1c9   : > { %v1440_v13 = vpop.permute.xlu0 %1439 }
 0x1cb   : > { %v1435_v32 = vpop.permute.xlu1 %1434 }
 0x1cd   : > { %v2679_v15 = vpop.permute.xlu0 %1449 }
 0x1cf   : > { %v1445_v51 = vpop.permute.xlu1 %1444 }
 0x1d1   : > { %v1460_v16 = vpop.permute.xlu0 %1459 }
 0x1d3   : > { %v1455_v53 = vpop.permute.xlu1 %1454 }
 0x1d5   : > { %v2683_v46 = vpop.permute.xlu0 %1469 }
 0x1d7   : > { %v2681_v36 = vpop.permute.xlu1 %1464 }
 0x1d9   : > { %v1480_v43 = vpop.permute.xlu0 %1479 }
 0x1db   : > { %v1475_v25 = vpop.permute.xlu1 %1474 }
 0x1dd   : > { %v1490_v33 = vpop.permute.xlu0 %1489 }
 0x1df   : > { %v1485_v48 = vpop.permute.xlu1 %1484 }
 0x1e3   : > { %v1495_v27 = vpop.permute.xlu1 %1494 }
 0x24d   : > { %v2038_v22 = vpop.f32.mrb[0].mxu1 }
 0x24e   : > { %v1564_v41 = vmul.f32 %v2038_v22, %v1415_v9  ;;  %v1211_v11 = vpop.f32.mrb[1].mxu1  ;;  %v1500_v9 = vpop.permute.xlu0 %1499  ;;  %v1353_v22 = vld [vmem:[#allocation2 + $0x78] sm:$0xff] }
 0x24f   : > { %v1562_v17 = vmul.f32 %v1405_v30, %v1211_v11  ;;  %v2039_v18 = vpop.f32.mrb[2].mxu1 }
 0x250   : > { %v1596_v23 = vadd.f32 %v1564_v41, %v1340_v39  ;;  %v1565_v19 = vmul.f32 %v2039_v18, %v1420_v29  ;;  %v1214_v21 = vpop.f32.mrb[3].mxu1 }
 0x251   : > { %v1594_v44 = vadd.f32 %v1562_v17, %v1338_v24  ;;  %v1563_v26 = vmul.f32 %v1410_v52, %v1214_v21  ;;  %v1351_v24 = vld [vmem:[#allocation2 + $0x68] sm:$0xff] }
 0x252   : > { %1628 = vst.msk [vmem:[#allocation2 + $0x10] sm:$0xff] %vm494_vm1, %v1596_v23  ;;  %v1597_v28 = vadd.f32 %v1565_v19, %v1341_v20  ;;  %v1510_v17 = vpop.permute.xlu0 %1509 }
 0x253   : > { %1626 = vst.msk [vmem:[#allocation2] sm:$0xff] %vm494_vm1, %v1594_v44  ;;  %v1595_v14 = vadd.f32 %v1563_v26, %v1339_v38  ;;  %v1356_v38 = vld [vmem:[#allocation2 + $0x90] sm:$0xff] }
 0x254   : > { %1629 = vst.msk [vmem:[#allocation2 + $0x18] sm:$0xff] %vm494_vm1, %v1597_v28  ;;  %v1354_v28 = vld [vmem:[#allocation2 + $0x80] sm:$0xff] }
 0x255   : > { %1627 = vst.msk [vmem:[#allocation2 + $0x8] sm:$0xff] %vm494_vm1, %v1595_v14 }
 0x256   : > { %v2042_v34 = vpop.f32.mrb[4].mxu1  ;;  %v1520_v14 = vpop.permute.xlu0 %1519 }
 0x257   : > { %v1568_v56 = vmul.f32 %v2042_v34, %v1435_v32  ;;  %v1227_v57 = vpop.f32.mrb[5].mxu1 }
 0x258   : > { %v1566_v59 = vmul.f32 %v1425_v10, %v1227_v57  ;;  %v2043_v45 = vpop.f32.mrb[6].mxu1 }
 0x259   : > { %v1600_v61 = vadd.f32 %v1568_v56, %v1344_v55  ;;  %v1569_v31 = vmul.f32 %v2043_v45, %v1440_v13  ;;  %v1230_v35 = vpop.f32.mrb[7].mxu1 }
 0x25a   : > { %v1598_v62 = vadd.f32 %v1566_v59, %v1342_v58  ;;  %v1567_v63 = vmul.f32 %v1430_v12, %v1230_v35  ;;  %v1352_v12 = vld [vmem:[#allocation2 + $0x70] sm:$0xff]  ;;  %v1355_v58 = vld [vmem:[#allocation2 + $0x88] sm:$0xff] }
 0x25b   : > { %1632 = vst.msk [vmem:[#allocation2 + $0x30] sm:$0xff] %vm494_vm1, %v1600_v61  ;;  %v1601_v0 = vadd.f32 %v1569_v31, %v1345_v60  ;;  %v1530_v31 = vpop.permute.xlu0 %1529 }
 0x25c   : > { %1630 = vst.msk [vmem:[#allocation2 + $0x20] sm:$0xff] %vm494_vm1, %v1598_v62  ;;  %v1599_v50 = vadd.f32 %v1567_v63, %v1343_v37  ;;  %v1360_v37 = vld [vmem:[#allocation2 + $0xb0] sm:$0xff] }
 0x25d   : > { %1633 = vst.msk [vmem:[#allocation2 + $0x38] sm:$0xff] %vm494_vm1, %v1601_v0  ;;  %v1358_v0 = vld [vmem:[#allocation2 + $0xa0] sm:$0xff] }
 0x25e   : > { %1631 = vst.msk [vmem:[#allocation2 + $0x28] sm:$0xff] %vm494_vm1, %v1599_v50  ;;  %v2046_v1 = vpop.f32.mrb[8].mxu1 }
 0x25f   : > { %v1572_v3 = vmul.f32 %v2046_v1, %v1455_v53  ;;  %v1243_v4 = vpop.f32.mrb[9].mxu1  ;;  %v1505_v53 = vpop.permute.xlu1 %1504 }
 0x260   : > { %v1570_v47 = vmul.f32 %v1445_v51, %v1243_v4  ;;  %v2047_v49 = vpop.f32.mrb[10].mxu1  ;;  %v1350_v51 = vld [vmem:[#allocation2 + $0x60] sm:$0xff]  ;;  %v1359_v4 = vld [vmem:[#allocation2 + $0xa8] sm:$0xff] }
 0x261   : > { %v1604_v7 = vadd.f32 %v1572_v3, %v1348_v2  ;;  %v1573_v8 = vmul.f32 %v2047_v49, %v1460_v16  ;;  %v1246_v40 = vpop.f32.mrb[11].mxu1 }
 0x262   : > { %v1602_v54 = vadd.f32 %v1570_v47, %v1346_v5  ;;  %v1571_v52 = vmul.f32 %v2679_v15, %v1246_v40 }
 0x263   : > { %1636 = vst.msk [vmem:[#allocation2 + $0x50] sm:$0xff] %vm494_vm1, %v1604_v7  ;;  %v1605_v30 = vadd.f32 %v1573_v8, %v1349_v6  ;;  %v1515_v21 = vpop.permute.xlu1 %1514  ;;  %v1540_v7 = vpop.permute.xlu0 %1539 }
 0x264   : > { %1634 = vst.msk [vmem:[#allocation2 + $0x40] sm:$0xff] %vm494_vm1, %v1602_v54  ;;  %v1603_v29 = vadd.f32 %v1571_v52, %v1347_v42  ;;  %v1364_v42 = vld [vmem:[#allocation2 + $0xd0] sm:$0xff]  ;;  %v1362_v52 = vld [vmem:[#allocation2 + $0xc0] sm:$0xff] }
 0x265   : > { %1637 = vst.msk [vmem:[#allocation2 + $0x58] sm:$0xff] %vm494_vm1, %v1605_v30 }
 0x266   : > { %1635 = vst.msk [vmem:[#allocation2 + $0x48] sm:$0xff] %vm494_vm1, %v1603_v29  ;;  %v2050_v10 = vpop.f32.mrb[12].mxu1 }
 0x267   : > { %v1576_v32 = vmul.f32 %v2050_v10, %v1475_v25  ;;  %v1259_v13 = vpop.f32.mrb[13].mxu1  ;;  %v1525_v60 = vpop.permute.xlu1 %1524  ;;  %v1365_v10 = vld [vmem:[#allocation2 + $0xd8] sm:$0xff] }
 0x268   : > { %v1574_v16 = vmul.f32 %v2681_v36, %v1259_v13  ;;  %v2051_v15 = vpop.f32.mrb[14].mxu1 }
 0x269   : > { %v1608_v39 = vadd.f32 %v1576_v32, %v1352_v12  ;;  %v1577_v41 = vmul.f32 %v2051_v15, %v1480_v43  ;;  %v1262_v11 = vpop.f32.mrb[15].mxu1 }
 0x26a   : > { %v1606_v18 = vadd.f32 %v1574_v16, %v1350_v51  ;;  %v1575_v20 = vmul.f32 %v2683_v46, %v1262_v11  ;;  %v1357_v46 = vld [vmem:[#allocation2 + $0x98] sm:$0xff]  ;;  %v1363_v51 = vld [vmem:[#allocation2 + $0xc8] sm:$0xff] }
 0x26b   : > { %1640 = vst.msk [vmem:[#allocation2 + $0x70] sm:$0xff] %vm494_vm1, %v1608_v39  ;;  %v1609_v23 = vadd.f32 %v1577_v41, %v1353_v22  ;;  %v1535_v5 = vpop.permute.xlu1 %1534 }
 0x26c   : > { %1638 = vst.msk [vmem:[#allocation2 + $0x60] sm:$0xff] %vm494_vm1, %v1606_v18  ;;  %v1607_v19 = vadd.f32 %v1575_v20, %v1351_v24  ;;  %v1368_v24 = vld [vmem:[#allocation2 + $0xf0] sm:$0xff]  ;;  %v1366_v20 = vld [vmem:[#allocation2 + $0xe0] sm:$0xff] }
 0x26d   : > { %1641 = vst.msk [vmem:[#allocation2 + $0x78] sm:$0xff] %vm494_vm1, %v1609_v23 }
 0x26e   : > { %1639 = vst.msk [vmem:[#allocation2 + $0x68] sm:$0xff] %vm494_vm1, %v1607_v19  ;;  %v2054_v36 = vpop.f32.mrb[16].mxu1 }
 0x26f   : > { %v1580_v44 = vmul.f32 %v2054_v36, %v1495_v27  ;;  %v1275_v26 = vpop.f32.mrb[17].mxu1  ;;  %v1545_v30 = vpop.permute.xlu1 %1544  ;;  %v1369_v36 = vld [vmem:[#allocation2 + $0xf8] sm:$0xff] }
 0x270   : > { %v1578_v25 = vmul.f32 %v1485_v48, %v1275_v26  ;;  %v2055_v34 = vpop.f32.mrb[18].mxu1 }
 0x271   : > { %v1612_v55 = vadd.f32 %v1580_v44, %v1356_v38  ;;  %v1581_v56 = vmul.f32 %v2055_v34, %v1500_v9  ;;  %v1278_v57 = vpop.f32.mrb[19].mxu1 }
 0x272   : > { %v1610_v43 = vadd.f32 %v1578_v25, %v1354_v28  ;;  %v1579_v59 = vmul.f32 %v1490_v33, %v1278_v57  ;;  %v1361_v33 = vld [vmem:[#allocation2 + $0xb8] sm:$0xff]  ;;  %v1367_v28 = vld [vmem:[#allocation2 + $0xe8] sm:$0xff]  ;;  %v1665_v57 = vld [vmem:[#allocation2 + $0x10] sm:$0xff] (%p1658_p6) }
 0x273   : > { %1644 = vst.msk [vmem:[#allocation2 + $0x90] sm:$0xff] %vm494_vm1, %v1612_v55  ;;  %v1613_v45 = vadd.f32 %v1581_v56, %v1357_v46  ;;  %v1555_v41 = vpop.permute.xlu1 %1554  ;;  %v1663_v55 = vld [vmem:[#allocation2] sm:$0xff] (%p1658_p6)  ;;  %v1664_v56 = vld [vmem:[#allocation2 + $0x8] sm:$0xff] (%p1658_p6)  ;;  %1697 = vst.msk [vmem:[%s2863_s4 + $0x10] sm:$0xff] (%p1658_p6), %vm494_vm1, %v1665_v57 }
 0x274   : > { %1642 = vst.msk [vmem:[#allocation2 + $0x80] sm:$0xff] %vm494_vm1, %v1610_v43  ;;  %v1611_v61 = vadd.f32 %v1579_v59, %v1355_v58  ;;  %1695 = vst.msk [vmem:[%s2863_s4] sm:$0xff] (%p1658_p6), %vm494_vm1, %v1663_v55  ;;  %v1666_v58 = vld [vmem:[#allocation2 + $0x18] sm:$0xff] (%p1658_p6)  ;;  %v1667_v43 = vld [vmem:[#allocation2 + $0x20] sm:$0xff] (%p1658_p6) }
 0x275   : > { %1645 = vst.msk [vmem:[#allocation2 + $0x98] sm:$0xff] %vm494_vm1, %v1613_v45  ;;  %1696 = vst.msk [vmem:[%s2863_s4 + $0x8] sm:$0xff] (%p1658_p6), %vm494_vm1, %v1664_v56  ;;  %v1668_v59 = vld [vmem:[#allocation2 + $0x28] sm:$0xff] (%p1658_p6)  ;;  %v1669_v45 = vld [vmem:[#allocation2 + $0x30] sm:$0xff] (%p1658_p6) }
 0x276   : > { %1643 = vst.msk [vmem:[#allocation2 + $0x88] sm:$0xff] %vm494_vm1, %v1611_v61  ;;  %v2058_v35 = vpop.f32.mrb[20].mxu1  ;;  %1698 = vst.msk [vmem:[%s2863_s4 + $0x18] sm:$0xff] (%p1658_p6), %vm494_vm1, %v1666_v58  ;;  %v1671_v61 = vld [vmem:[#allocation2 + $0x40] sm:$0xff] (%p1658_p6) }
 0x277   : > { %v1584_v62 = vmul.f32 %v2058_v35, %v1515_v21  ;;  %v1291_v63 = vpop.f32.mrb[21].mxu1  ;;  %1699 = vst.msk [vmem:[%s2863_s4 + $0x20] sm:$0xff] (%p1658_p6), %vm494_vm1, %v1667_v43  ;;  %1700 = vst.msk [vmem:[%s2863_s4 + $0x28] sm:$0xff] (%p1658_p6), %vm494_vm1, %v1668_v59  ;;  %v1673_v35 = vld [vmem:[#allocation2 + $0x50] sm:$0xff] (%p1658_p6) }
 0x278   : > { %v1582_v48 = vmul.f32 %v1505_v53, %v1291_v63  ;;  %v2059_v50 = vpop.f32.mrb[22].mxu1  ;;  %v1550_v53 = vpop.permute.xlu0 %1549  ;;  %1701 = vst.msk [vmem:[%s2863_s4 + $0x30] sm:$0xff] (%p1658_p6), %vm494_vm1, %v1669_v45  ;;  %1703 = vst.msk [vmem:[%s2863_s4 + $0x40] sm:$0xff] (%p1658_p6), %vm494_vm1, %v1671_v61  ;;  %v1676_v63 = vld [vmem:[#allocation2 + $0x68] sm:$0xff] (%p1658_p6) }
 0x279   : > { %v1616_v1 = vadd.f32 %v1584_v62, %v1360_v37  ;;  %v1585_v2 = vmul.f32 %v2059_v50, %v1520_v14  ;;  %v1294_v3 = vpop.f32.mrb[23].mxu1  ;;  %v1674_v37 = vld [vmem:[#allocation2 + $0x58] sm:$0xff] (%p1658_p6)  ;;  %1705 = vst.msk [vmem:[%s2863_s4 + $0x50] sm:$0xff] (%p1658_p6), %vm494_vm1, %v1673_v35  ;;  %v1675_v62 = vld [vmem:[#allocation2 + $0x60] sm:$0xff] (%p1658_p6)  ;;  %1708 = vst.msk [vmem:[%s2863_s4 + $0x68] sm:$0xff] (%p1658_p6), %vm494_vm1, %v1676_v63 }
 0x27a   : > { %v1614_v47 = vadd.f32 %v1582_v48, %v1358_v0  ;;  %v1583_v49 = vmul.f32 %v1510_v17, %v1294_v3  ;;  %1706 = vst.msk [vmem:[%s2863_s4 + $0x58] sm:$0xff] (%p1658_p6), %vm494_vm1, %v1674_v37  ;;  %v1677_v0 = vld [vmem:[#allocation2 + $0x70] sm:$0xff] (%p1658_p6)  ;;  %1707 = vst.msk [vmem:[%s2863_s4 + $0x60] sm:$0xff] (%p1658_p6), %vm494_vm1, %v1675_v62  ;;  %v1678_v48 = vld [vmem:[#allocation2 + $0x78] sm:$0xff] (%p1658_p6) }
 0x27b   : > { %1648 = vst.msk [vmem:[#allocation2 + $0xb0] sm:$0xff] %vm494_vm1, %v1616_v1  ;;  %v1617_v6 = vadd.f32 %v1585_v2, %v1361_v33  ;;  %1709 = vst.msk [vmem:[%s2863_s4 + $0x70] sm:$0xff] (%p1658_p6), %vm494_vm1, %v1677_v0  ;;  %v1679_v50 = vld [vmem:[#allocation2 + $0x80] sm:$0xff] (%p1658_p6)  ;;  %v1681_v1 = vld [vmem:[#allocation2 + $0x90] sm:$0xff] (%p1658_p6) }
 0x27c   : > { %1646 = vst.msk [vmem:[#allocation2 + $0xa0] sm:$0xff] %vm494_vm1, %v1614_v47  ;;  %v1615_v8 = vadd.f32 %v1583_v49, %v1359_v4  ;;  %v1560_v23 = vpop.permute.xlu0 %1559  ;;  %1710 = vst.msk [vmem:[%s2863_s4 + $0x78] sm:$0xff] (%p1658_p6), %vm494_vm1, %v1678_v48  ;;  %v1682_v2 = vld [vmem:[#allocation2 + $0x98] sm:$0xff] (%p1658_p6) }
 0x27d   : > { %1649 = vst.msk [vmem:[#allocation2 + $0xb8] sm:$0xff] %vm494_vm1, %v1617_v6  ;;  %v1680_v33 = vld [vmem:[#allocation2 + $0x88] sm:$0xff] (%p1658_p6)  ;;  %1711 = vst.msk [vmem:[%s2863_s4 + $0x80] sm:$0xff] (%p1658_p6), %vm494_vm1, %v1679_v50 }
 0x27e   : > { %1647 = vst.msk [vmem:[#allocation2 + $0xa8] sm:$0xff] %vm494_vm1, %v1615_v8  ;;  %v2062_v40 = vpop.f32.mrb[24].mxu1  ;;  %1712 = vst.msk [vmem:[%s2863_s4 + $0x88] sm:$0xff] (%p1658_p6), %vm494_vm1, %v1680_v33 }
 0x27f   : > { %v1588_v27 = vmul.f32 %v2062_v40, %v1535_v5  ;;  %v1307_v54 = vpop.f32.mrb[25].mxu1  ;;  %1713 = vst.msk [vmem:[%s2863_s4 + $0x90] sm:$0xff] (%p1658_p6), %vm494_vm1, %v1681_v1  ;;  %1714 = vst.msk [vmem:[%s2863_s4 + $0x98] sm:$0xff] (%p1658_p6), %vm494_vm1, %v1682_v2 }
 0x280   : > { %v1586_v9 = vmul.f32 %v1525_v60, %v1307_v54  ;;  %v2063_v29 = vpop.f32.mrb[26].mxu1  ;;  %v1670_v60 = vld [vmem:[#allocation2 + $0x38] sm:$0xff] (%p1658_p6) }
 0x281   : > { %v1620_v12 = vadd.f32 %v1588_v27, %v1364_v42  ;;  %v1589_v32 = vmul.f32 %v2063_v29, %v1540_v7  ;;  %v1310_v13 = vpop.f32.mrb[27].mxu1  ;;  %1702 = vst.msk [vmem:[%s2863_s4 + $0x38] sm:$0xff] (%p1658_p6), %vm494_vm1, %v1670_v60 }
 0x282   : > { %v1618_v16 = vadd.f32 %v1586_v9, %v1362_v52  ;;  %v1587_v15 = vmul.f32 %v1530_v31, %v1310_v13  ;;  %v1672_v31 = vld [vmem:[#allocation2 + $0x48] sm:$0xff] (%p1658_p6)  ;;  %v1685_v5 = vld [vmem:[#allocation2 + $0xb0] sm:$0xff] (%p1658_p6) }
 0x283   : > { %1652 = vst.msk [vmem:[#allocation2 + $0xd0] sm:$0xff] %vm494_vm1, %v1620_v12  ;;  %v1621_v22 = vadd.f32 %v1589_v32, %v1365_v10  ;;  %1704 = vst.msk [vmem:[%s2863_s4 + $0x48] sm:$0xff] (%p1658_p6), %vm494_vm1, %v1672_v31  ;;  %v1683_v3 = vld [vmem:[#allocation2 + $0xa0] sm:$0xff] (%p1658_p6) }
 0x284   : > { %1650 = vst.msk [vmem:[#allocation2 + $0xc0] sm:$0xff] %vm494_vm1, %v1618_v16  ;;  %v1619_v39 = vadd.f32 %v1587_v15, %v1363_v51  ;;  %1715 = vst.msk [vmem:[%s2863_s4 + $0xa0] sm:$0xff] (%p1658_p6), %vm494_vm1, %v1683_v3  ;;  %v1686_v47 = vld [vmem:[#allocation2 + $0xb8] sm:$0xff] (%p1658_p6) }
 0x285   : > { %1653 = vst.msk [vmem:[#allocation2 + $0xd8] sm:$0xff] %vm494_vm1, %v1621_v22  ;;  %v1684_v4 = vld [vmem:[#allocation2 + $0xa8] sm:$0xff] (%p1658_p6)  ;;  %1717 = vst.msk [vmem:[%s2863_s4 + $0xb0] sm:$0xff] (%p1658_p6), %vm494_vm1, %v1685_v5 }
 0x286   : > { %1651 = vst.msk [vmem:[#allocation2 + $0xc8] sm:$0xff] %vm494_vm1, %v1619_v39  ;;  %v2066_v11 = vpop.f32.mrb[28].mxu1  ;;  %1716 = vst.msk [vmem:[%s2863_s4 + $0xa8] sm:$0xff] (%p1658_p6), %vm494_vm1, %v1684_v4 }
 0x287   : > { %v1592_v17 = vmul.f32 %v2066_v11, %v1555_v41  ;;  %v1323_v18 = vpop.f32.mrb[29].mxu1  ;;  %1718 = vst.msk [vmem:[%s2863_s4 + $0xb8] sm:$0xff] (%p1658_p6), %vm494_vm1, %v1686_v47 }
 0x288   : > { %v1590_v19 = vmul.f32 %v1545_v30, %v1323_v18  ;;  %v2067_v21 = vpop.f32.mrb[30].mxu1  ;;  %1662 = sbr.rel (!%p1658_p6) target bundleno = 663 (0x297), region = 44 }
 0x289   : > { %v1624_v38 = vadd.f32 %v1592_v17, %v1368_v24  ;;  %v1593_v44 = vmul.f32 %v2067_v21, %v1560_v23  ;;  %v1326_v26 = vpop.f32.mrb[31].mxu1 }
 0x28a   : > { %v1622_v14 = vadd.f32 %v1590_v19, %v1366_v20  ;;  %v1591_v25 = vmul.f32 %v1550_v53, %v1326_v26  ;;  %v1689_v7 = vld [vmem:[#allocation2 + $0xd0] sm:$0xff] (%p1658_p6) }
 0x28b   : > { %1656 = vst.msk [vmem:[#allocation2 + $0xf0] sm:$0xff] %vm494_vm1, %v1624_v38  ;;  %v1625_v34 = vadd.f32 %v1593_v44, %v1369_v36  ;;  %v1687_v49 = vld [vmem:[#allocation2 + $0xc0] sm:$0xff] (%p1658_p6)  ;;  %1721 = vst.msk [vmem:[%s2863_s4 + $0xd0] sm:$0xff] (%p1658_p6), %vm494_vm1, %v1689_v7 }
 0x28c   : > { %1654 = vst.msk [vmem:[#allocation2 + $0xe0] sm:$0xff] %vm494_vm1, %v1622_v14  ;;  %v1623_v46 = vadd.f32 %v1591_v25, %v1367_v28  ;;  %1719 = vst.msk [vmem:[%s2863_s4 + $0xc0] sm:$0xff] (%p1658_p6), %vm494_vm1, %v1687_v49  ;;  %v1690_v8 = vld [vmem:[#allocation2 + $0xd8] sm:$0xff] (%p1658_p6) }
 0x28d   : > { %1657 = vst.msk [vmem:[#allocation2 + $0xf8] sm:$0xff] %vm494_vm1, %v1625_v34  ;;  %v1688_v6 = vld [vmem:[#allocation2 + $0xc8] sm:$0xff] (%p1658_p6)  ;;  %1722 = vst.msk [vmem:[%s2863_s4 + $0xd8] sm:$0xff] (%p1658_p6), %vm494_vm1, %v1690_v8 }
 0x28e   : > { %1655 = vst.msk [vmem:[#allocation2 + $0xe8] sm:$0xff] %vm494_vm1, %v1623_v46  ;;  %1720 = vst.msk [vmem:[%s2863_s4 + $0xc8] sm:$0xff] (%p1658_p6), %vm494_vm1, %v1688_v6 }
 0x292   : > { %v1693_v27 = vld [vmem:[#allocation2 + $0xf0] sm:$0xff] }
 0x293   : > { %v1691_v40 = vld [vmem:[#allocation2 + $0xe0] sm:$0xff]  ;;  %1725 = vst.msk [vmem:[%s2863_s4 + $0xf0] sm:$0xff] %vm494_vm1, %v1693_v27 }
 0x294   : > { %1723 = vst.msk [vmem:[%s2863_s4 + $0xe0] sm:$0xff] %vm494_vm1, %v1691_v40  ;;  %v1694_v54 = vld [vmem:[#allocation2 + $0xf8] sm:$0xff] }
 0x295   : > { %v1692_v42 = vld [vmem:[#allocation2 + $0xe8] sm:$0xff]  ;;  %1726 = vst.msk [vmem:[%s2863_s4 + $0xf8] sm:$0xff] %vm494_vm1, %v1694_v54 }
 0x296   : > { %1724 = vst.msk [vmem:[%s2863_s4 + $0xe8] sm:$0xff] %vm494_vm1, %v1692_v42 }
 0x297 PF: > { %s14_s17 = sadd.s32 1, %s2269_s17   ;;  %s2864_s15 = smov %s2265_s16 }
 0x298   : > { %p11_p7 = scmp.ge.s32.totalorder %s14_s17, 6   ;;  %s2865_s16 = smov %s2867_s18 }
 0x29a   :  { %13 = sbr.rel (!%p11_p7) target bundleno = 2 (0x2), region = 83 }

</bundles_post_ra>
